<compile_context>
chip_gen: v6e
topology: v6e:2x2x1
jax: 0.10.0
libtpu: 0.0.40
codegen_flags: <defaults>
</compile_context>

<pallas_src>
import math
from functools import lru_cache, partial

import jax
import jax.numpy as jnp
from jax.experimental import pallas as pl
from jax.experimental.pallas import tpu as pltpu


# ---------------------------------------------------------------------------
# Parameter construction (deterministic, matches FixedEmbedding.__init__)
# ---------------------------------------------------------------------------
def fixed_embedding_table(c_in: int, d_model: int) -> jnp.ndarray:
    assert d_model % 2 == 0, "FixedEmbedding requires even d_model"
    position = jnp.arange(c_in, dtype=jnp.float32)[:, None]            # (c_in, 1)
    div_term = jnp.exp(
        jnp.arange(0, d_model, 2, dtype=jnp.float32)
        * -(math.log(10000.0) / d_model)
    )                                                                  # (d_model/2,)
    w = jnp.zeros((c_in, d_model), dtype=jnp.float32)
    w = w.at[:, 0::2].set(jnp.sin(position * div_term))
    w = w.at[:, 1::2].set(jnp.cos(position * div_term))
    return w


# Tables actually used by forward(): minute(60), hour(24), weekday(7), day(32),
# month(13) = 136 rows, padded to 256 so the fused matmul K-dim is MXU friendly.
_K_BASE = 256


@lru_cache(maxsize=None)
def _combined_table_and_offsets(d_model: int):
    minute_tbl = fixed_embedding_table(60, d_model)
    hour_tbl = fixed_embedding_table(24, d_model)
    weekday_tbl = fixed_embedding_table(7, d_model)
    day_tbl = fixed_embedding_table(32, d_model)
    month_tbl = fixed_embedding_table(13, d_model)
    cat = jnp.concatenate(
        [minute_tbl, hour_tbl, weekday_tbl, day_tbl, month_tbl], axis=0)  # (136, d)
    cat = jnp.pad(cat, ((0, _K_BASE - cat.shape[0]), (0, 0)))             # (256, d)
    off_minute, off_hour, off_weekday, off_day, off_month = 0, 60, 84, 91, 123
    # x column order: [month, day, weekday, hour, minute, second].
    # 'second' deliberately aliases the minute table (as in the PyTorch module).
    col_offsets = (off_month, off_day, off_weekday, off_hour, off_minute, off_minute)
    return cat, col_offsets


# ---------------------------------------------------------------------------
# Pallas kernel: fused one-hot construction + single MXU matmul
# ---------------------------------------------------------------------------
def temporal_embedding_kernel(widx_ref, table_ref, out_ref):
    widx = widx_ref[...]                                   # (TG, 6*G) int32
    tg = widx.shape[0]
    k = table_ref.shape[0]
    iota = jax.lax.broadcasted_iota(jnp.int32, (tg, k), 1)
    one_hot = jnp.zeros((tg, k), jnp.float32)
    # 6*G static compares, unrolled at trace time (small constant).
    for c in range(widx.shape[1]):
        one_hot = one_hot + (widx[:, c:c + 1] == iota).astype(jnp.float32)
    out_ref[...] = jnp.dot(one_hot, table_ref[...],
                           preferred_element_type=jnp.float32)


# ---------------------------------------------------------------------------
# Wrapper
# ---------------------------------------------------------------------------
@partial(jax.jit, static_argnums=1)
def temporal_embedding(x_mark: jnp.ndarray, d_model: int) -> jnp.ndarray:
    """x_mark: (B, T, >=6) int -> (B, T, d_model) float32."""
    B, T, C = x_mark.shape
    assert C >= 6
    cat_tbl, col_offsets = _combined_table_and_offsets(d_model)

    # Fold G consecutive logical rows into one lane-dense (>=128 wide) output row.
    if d_model < 128 and 128 % d_model == 0:
        G = min(128 // d_model, 8)
    else:
        G = 1
    D_wide = G * d_model
    K = G * _K_BASE

    N = B * T
    row_align = 8 * G                       # keeps tile_groups a multiple of 8
    # Target tile: <= ~4 MiB f32 output block, <= 2048 logical rows, >= row_align.
    max_rows = max(row_align, (4 * 1024 * 1024) // (d_model * 4))
    target = min(2048, max_rows, ((N + row_align - 1) // row_align) * row_align)
    tile_rows = max(row_align, (target // row_align) * row_align)
    N_pad = ((N + tile_rows - 1) // tile_rows) * tile_rows
    n_groups = N_pad // G
    tile_groups = tile_rows // G

    idx = x_mark.reshape(N, C)[:, :6].astype(jnp.int32)
    # Shift each feature into its segment of the concatenated table.
    cidx = idx + jnp.asarray(col_offsets, jnp.int32)[None, :]            # (N, 6)
    if N_pad != N:
        cidx = jnp.pad(cidx, ((0, N_pad - N), (0, 0)))  # pads hit valid rows; sliced off
    # Row k within a group gets +k*256 so its one-hot lands in block-diag segment k.
    widx = (cidx.reshape(n_groups, G, 6)
            + (jnp.arange(G, dtype=jnp.int32) * _K_BASE)[None, :, None])
    widx = widx.reshape(n_groups, 6 * G)

    # Block-diagonal table: (G*256, G*d_model); identical to cat_tbl when G == 1.
    big_tbl = jnp.kron(jnp.eye(G, dtype=jnp.float32), cat_tbl)

    grid = (n_groups // tile_groups,)
    out_wide = pl.pallas_call(
        temporal_embedding_kernel,
        out_shape=jax.ShapeDtypeStruct((n_groups, D_wide), jnp.float32),
        grid=grid,
        in_specs=[
            pl.BlockSpec((tile_groups, 6 * G), lambda i: (i, 0)),
            pl.BlockSpec((K, D_wide), lambda i: (0, 0)),
        ],
        out_specs=pl.BlockSpec((tile_groups, D_wide), lambda i: (i, 0)),
        compiler_params=pltpu.CompilerParams(
            dimension_semantics=("parallel",),
            vmem_limit_bytes=32 * 1024 * 1024),
    )(widx, big_tbl)

    # (n_groups, G*d_model) -> (N_pad, d_model) is a free row-major view.
    return out_wide.reshape(N_pad, d_model)[:N].reshape(B, T, d_model)


# ---------------------------------------------------------------------------
# Pure-JAX reference for sanity checking.
# ---------------------------------------------------------------------------
def temporal_embedding_ref(x_mark: jnp.ndarray, d_model: int) -> jnp.ndarray:
    minute_tbl = fixed_embedding_table(60, d_model)
    hour_tbl = fixed_embedding_table(24, d_model)
    weekday_tbl = fixed_embedding_table(7, d_model)
    day_tbl = fixed_embedding_table(32, d_model)
    month_tbl = fixed_embedding_table(13, d_model)
    x = x_mark.astype(jnp.int32)
    second_x = jnp.take(minute_tbl, x[:, :, 5], axis=0)
    minute_x = jnp.take(minute_tbl, x[:, :, 4], axis=0)
    hour_x = jnp.take(hour_tbl, x[:, :, 3], axis=0)
    weekday_x = jnp.take(weekday_tbl, x[:, :, 2], axis=0)
    day_x = jnp.take(day_tbl, x[:, :, 1], axis=0)
    month_x = jnp.take(month_tbl, x[:, :, 0], axis=0)
    return hour_x + weekday_x + day_x + month_x + minute_x + second_x


if __name__ == "__main__":
    B, T, d_model = 2, 8, 32
    key = jax.random.PRNGKey(0)
    kmo, kda, kwd, khr, kmi, kse = jax.random.split(key, 6)
    # [month, day, weekday, hour, minute, second]
    x_mark = jnp.stack(
        [
            jax.random.randint(kmo, (B, T), 0, 13),
            jax.random.randint(kda, (B, T), 0, 32),
            jax.random.randint(kwd, (B, T), 0, 7),
            jax.random.randint(khr, (B, T), 0, 24),
            jax.random.randint(kmi, (B, T), 0, 60),
            jax.random.randint(kse, (B, T), 0, 60),
        ],
        axis=-1,
    ).astype(jnp.int32)

    out = temporal_embedding(x_mark, d_model)
    out = jax.block_until_ready(out)

    ref = temporal_embedding_ref(x_mark, d_model)
    assert out.shape == (B, T, d_model)
    assert jnp.allclose(out, ref, atol=1e-5), "mismatch vs reference"

    print("KERNEL_OK")
</pallas_src>

<mosaic_0001>
module attributes {stable_mosaic.version = 11 : i64} {
  func.func @temporal_embedding_kernel(%arg0: i32, %arg1: memref<8x24xi32, #tpu.memory_space<vmem>>, %arg2: memref<1024x128xf32, #tpu.memory_space<vmem>>, %arg3: memref<8x128xf32, #tpu.memory_space<vmem>>) attributes {dimension_semantics = [#tpu.dimension_semantics<parallel>], iteration_bounds = array<i64: 1>, scalar_prefetch = 0 : i64, scratch_operands = 0 : i64, tpu.core_type = #tpu.core_type<tc>, window_params = [{transform_indices = @transform_0, window_bounds = array<i64: 8, 24>}, {pipeline_mode = #tpu.pipeline_mode<synchronous>, transform_indices = @transform_1, window_bounds = array<i64: 1024, 128>}, {transform_indices = @transform_2, window_bounds = array<i64: 8, 128>}]} {
    %c0 = arith.constant 0 : index
    %c0_0 = arith.constant 0 : index
    %0 = vector.load %arg1[%c0, %c0_0] : memref<8x24xi32, #tpu.memory_space<vmem>>, vector<8x24xi32>
    %1 = tpu.iota {dimensions = array<i32: 1>} : vector<8x1024xi32>
    %cst = arith.constant 0.000000e+00 : f32
    %2 = vector.broadcast %cst : f32 to vector<8x1024xf32>
    %3 = vector.extract_strided_slice %0 {offsets = [0, 0], sizes = [8, 1], strides = [1, 1]} : vector<8x24xi32> to vector<8x1xi32>
    %4 = vector.broadcast %3 : vector<8x1xi32> to vector<8x1024xi32>
    %5 = arith.cmpi eq, %4, %1 : vector<8x1024xi32>
    %6 = arith.extui %5 : vector<8x1024xi1> to vector<8x1024xi32>
    %7 = arith.sitofp %6 : vector<8x1024xi32> to vector<8x1024xf32>
    %8 = arith.addf %2, %7 : vector<8x1024xf32>
    %9 = vector.extract_strided_slice %0 {offsets = [0, 1], sizes = [8, 1], strides = [1, 1]} : vector<8x24xi32> to vector<8x1xi32>
    %10 = vector.broadcast %9 : vector<8x1xi32> to vector<8x1024xi32>
    %11 = arith.cmpi eq, %10, %1 : vector<8x1024xi32>
    %12 = arith.extui %11 : vector<8x1024xi1> to vector<8x1024xi32>
    %13 = arith.sitofp %12 : vector<8x1024xi32> to vector<8x1024xf32>
    %14 = arith.addf %8, %13 : vector<8x1024xf32>
    %15 = vector.extract_strided_slice %0 {offsets = [0, 2], sizes = [8, 1], strides = [1, 1]} : vector<8x24xi32> to vector<8x1xi32>
    %16 = vector.broadcast %15 : vector<8x1xi32> to vector<8x1024xi32>
    %17 = arith.cmpi eq, %16, %1 : vector<8x1024xi32>
    %18 = arith.extui %17 : vector<8x1024xi1> to vector<8x1024xi32>
    %19 = arith.sitofp %18 : vector<8x1024xi32> to vector<8x1024xf32>
    %20 = arith.addf %14, %19 : vector<8x1024xf32>
    %21 = vector.extract_strided_slice %0 {offsets = [0, 3], sizes = [8, 1], strides = [1, 1]} : vector<8x24xi32> to vector<8x1xi32>
    %22 = vector.broadcast %21 : vector<8x1xi32> to vector<8x1024xi32>
    %23 = arith.cmpi eq, %22, %1 : vector<8x1024xi32>
    %24 = arith.extui %23 : vector<8x1024xi1> to vector<8x1024xi32>
    %25 = arith.sitofp %24 : vector<8x1024xi32> to vector<8x1024xf32>
    %26 = arith.addf %20, %25 : vector<8x1024xf32>
    %27 = vector.extract_strided_slice %0 {offsets = [0, 4], sizes = [8, 1], strides = [1, 1]} : vector<8x24xi32> to vector<8x1xi32>
    %28 = vector.broadcast %27 : vector<8x1xi32> to vector<8x1024xi32>
    %29 = arith.cmpi eq, %28, %1 : vector<8x1024xi32>
    %30 = arith.extui %29 : vector<8x1024xi1> to vector<8x1024xi32>
    %31 = arith.sitofp %30 : vector<8x1024xi32> to vector<8x1024xf32>
    %32 = arith.addf %26, %31 : vector<8x1024xf32>
    %33 = vector.extract_strided_slice %0 {offsets = [0, 5], sizes = [8, 1], strides = [1, 1]} : vector<8x24xi32> to vector<8x1xi32>
    %34 = vector.broadcast %33 : vector<8x1xi32> to vector<8x1024xi32>
    %35 = arith.cmpi eq, %34, %1 : vector<8x1024xi32>
    %36 = arith.extui %35 : vector<8x1024xi1> to vector<8x1024xi32>
    %37 = arith.sitofp %36 : vector<8x1024xi32> to vector<8x1024xf32>
    %38 = arith.addf %32, %37 : vector<8x1024xf32>
    %39 = vector.extract_strided_slice %0 {offsets = [0, 6], sizes = [8, 1], strides = [1, 1]} : vector<8x24xi32> to vector<8x1xi32>
    %40 = vector.broadcast %39 : vector<8x1xi32> to vector<8x1024xi32>
    %41 = arith.cmpi eq, %40, %1 : vector<8x1024xi32>
    %42 = arith.extui %41 : vector<8x1024xi1> to vector<8x1024xi32>
    %43 = arith.sitofp %42 : vector<8x1024xi32> to vector<8x1024xf32>
    %44 = arith.addf %38, %43 : vector<8x1024xf32>
    %45 = vector.extract_strided_slice %0 {offsets = [0, 7], sizes = [8, 1], strides = [1, 1]} : vector<8x24xi32> to vector<8x1xi32>
    %46 = vector.broadcast %45 : vector<8x1xi32> to vector<8x1024xi32>
    %47 = arith.cmpi eq, %46, %1 : vector<8x1024xi32>
    %48 = arith.extui %47 : vector<8x1024xi1> to vector<8x1024xi32>
    %49 = arith.sitofp %48 : vector<8x1024xi32> to vector<8x1024xf32>
    %50 = arith.addf %44, %49 : vector<8x1024xf32>
    %51 = vector.extract_strided_slice %0 {offsets = [0, 8], sizes = [8, 1], strides = [1, 1]} : vector<8x24xi32> to vector<8x1xi32>
    %52 = vector.broadcast %51 : vector<8x1xi32> to vector<8x1024xi32>
    %53 = arith.cmpi eq, %52, %1 : vector<8x1024xi32>
    %54 = arith.extui %53 : vector<8x1024xi1> to vector<8x1024xi32>
    %55 = arith.sitofp %54 : vector<8x1024xi32> to vector<8x1024xf32>
    %56 = arith.addf %50, %55 : vector<8x1024xf32>
    %57 = vector.extract_strided_slice %0 {offsets = [0, 9], sizes = [8, 1], strides = [1, 1]} : vector<8x24xi32> to vector<8x1xi32>
    %58 = vector.broadcast %57 : vector<8x1xi32> to vector<8x1024xi32>
    %59 = arith.cmpi eq, %58, %1 : vector<8x1024xi32>
    %60 = arith.extui %59 : vector<8x1024xi1> to vector<8x1024xi32>
    %61 = arith.sitofp %60 : vector<8x1024xi32> to vector<8x1024xf32>
    %62 = arith.addf %56, %61 : vector<8x1024xf32>
    %63 = vector.extract_strided_slice %0 {offsets = [0, 10], sizes = [8, 1], strides = [1, 1]} : vector<8x24xi32> to vector<8x1xi32>
    %64 = vector.broadcast %63 : vector<8x1xi32> to vector<8x1024xi32>
    %65 = arith.cmpi eq, %64, %1 : vector<8x1024xi32>
    %66 = arith.extui %65 : vector<8x1024xi1> to vector<8x1024xi32>
    %67 = arith.sitofp %66 : vector<8x1024xi32> to vector<8x1024xf32>
    %68 = arith.addf %62, %67 : vector<8x1024xf32>
    %69 = vector.extract_strided_slice %0 {offsets = [0, 11], sizes = [8, 1], strides = [1, 1]} : vector<8x24xi32> to vector<8x1xi32>
    %70 = vector.broadcast %69 : vector<8x1xi32> to vector<8x1024xi32>
    %71 = arith.cmpi eq, %70, %1 : vector<8x1024xi32>
    %72 = arith.extui %71 : vector<8x1024xi1> to vector<8x1024xi32>
    %73 = arith.sitofp %72 : vector<8x1024xi32> to vector<8x1024xf32>
    %74 = arith.addf %68, %73 : vector<8x1024xf32>
    %75 = vector.extract_strided_slice %0 {offsets = [0, 12], sizes = [8, 1], strides = [1, 1]} : vector<8x24xi32> to vector<8x1xi32>
    %76 = vector.broadcast %75 : vector<8x1xi32> to vector<8x1024xi32>
    %77 = arith.cmpi eq, %76, %1 : vector<8x1024xi32>
    %78 = arith.extui %77 : vector<8x1024xi1> to vector<8x1024xi32>
    %79 = arith.sitofp %78 : vector<8x1024xi32> to vector<8x1024xf32>
    %80 = arith.addf %74, %79 : vector<8x1024xf32>
    %81 = vector.extract_strided_slice %0 {offsets = [0, 13], sizes = [8, 1], strides = [1, 1]} : vector<8x24xi32> to vector<8x1xi32>
    %82 = vector.broadcast %81 : vector<8x1xi32> to vector<8x1024xi32>
    %83 = arith.cmpi eq, %82, %1 : vector<8x1024xi32>
    %84 = arith.extui %83 : vector<8x1024xi1> to vector<8x1024xi32>
    %85 = arith.sitofp %84 : vector<8x1024xi32> to vector<8x1024xf32>
    %86 = arith.addf %80, %85 : vector<8x1024xf32>
    %87 = vector.extract_strided_slice %0 {offsets = [0, 14], sizes = [8, 1], strides = [1, 1]} : vector<8x24xi32> to vector<8x1xi32>
    %88 = vector.broadcast %87 : vector<8x1xi32> to vector<8x1024xi32>
    %89 = arith.cmpi eq, %88, %1 : vector<8x1024xi32>
    %90 = arith.extui %89 : vector<8x1024xi1> to vector<8x1024xi32>
    %91 = arith.sitofp %90 : vector<8x1024xi32> to vector<8x1024xf32>
    %92 = arith.addf %86, %91 : vector<8x1024xf32>
    %93 = vector.extract_strided_slice %0 {offsets = [0, 15], sizes = [8, 1], strides = [1, 1]} : vector<8x24xi32> to vector<8x1xi32>
    %94 = vector.broadcast %93 : vector<8x1xi32> to vector<8x1024xi32>
    %95 = arith.cmpi eq, %94, %1 : vector<8x1024xi32>
    %96 = arith.extui %95 : vector<8x1024xi1> to vector<8x1024xi32>
    %97 = arith.sitofp %96 : vector<8x1024xi32> to vector<8x1024xf32>
    %98 = arith.addf %92, %97 : vector<8x1024xf32>
    %99 = vector.extract_strided_slice %0 {offsets = [0, 16], sizes = [8, 1], strides = [1, 1]} : vector<8x24xi32> to vector<8x1xi32>
    %100 = vector.broadcast %99 : vector<8x1xi32> to vector<8x1024xi32>
    %101 = arith.cmpi eq, %100, %1 : vector<8x1024xi32>
    %102 = arith.extui %101 : vector<8x1024xi1> to vector<8x1024xi32>
    %103 = arith.sitofp %102 : vector<8x1024xi32> to vector<8x1024xf32>
    %104 = arith.addf %98, %103 : vector<8x1024xf32>
    %105 = vector.extract_strided_slice %0 {offsets = [0, 17], sizes = [8, 1], strides = [1, 1]} : vector<8x24xi32> to vector<8x1xi32>
    %106 = vector.broadcast %105 : vector<8x1xi32> to vector<8x1024xi32>
    %107 = arith.cmpi eq, %106, %1 : vector<8x1024xi32>
    %108 = arith.extui %107 : vector<8x1024xi1> to vector<8x1024xi32>
    %109 = arith.sitofp %108 : vector<8x1024xi32> to vector<8x1024xf32>
    %110 = arith.addf %104, %109 : vector<8x1024xf32>
    %111 = vector.extract_strided_slice %0 {offsets = [0, 18], sizes = [8, 1], strides = [1, 1]} : vector<8x24xi32> to vector<8x1xi32>
    %112 = vector.broadcast %111 : vector<8x1xi32> to vector<8x1024xi32>
    %113 = arith.cmpi eq, %112, %1 : vector<8x1024xi32>
    %114 = arith.extui %113 : vector<8x1024xi1> to vector<8x1024xi32>
    %115 = arith.sitofp %114 : vector<8x1024xi32> to vector<8x1024xf32>
    %116 = arith.addf %110, %115 : vector<8x1024xf32>
    %117 = vector.extract_strided_slice %0 {offsets = [0, 19], sizes = [8, 1], strides = [1, 1]} : vector<8x24xi32> to vector<8x1xi32>
    %118 = vector.broadcast %117 : vector<8x1xi32> to vector<8x1024xi32>
    %119 = arith.cmpi eq, %118, %1 : vector<8x1024xi32>
    %120 = arith.extui %119 : vector<8x1024xi1> to vector<8x1024xi32>
    %121 = arith.sitofp %120 : vector<8x1024xi32> to vector<8x1024xf32>
    %122 = arith.addf %116, %121 : vector<8x1024xf32>
    %123 = vector.extract_strided_slice %0 {offsets = [0, 20], sizes = [8, 1], strides = [1, 1]} : vector<8x24xi32> to vector<8x1xi32>
    %124 = vector.broadcast %123 : vector<8x1xi32> to vector<8x1024xi32>
    %125 = arith.cmpi eq, %124, %1 : vector<8x1024xi32>
    %126 = arith.extui %125 : vector<8x1024xi1> to vector<8x1024xi32>
    %127 = arith.sitofp %126 : vector<8x1024xi32> to vector<8x1024xf32>
    %128 = arith.addf %122, %127 : vector<8x1024xf32>
    %129 = vector.extract_strided_slice %0 {offsets = [0, 21], sizes = [8, 1], strides = [1, 1]} : vector<8x24xi32> to vector<8x1xi32>
    %130 = vector.broadcast %129 : vector<8x1xi32> to vector<8x1024xi32>
    %131 = arith.cmpi eq, %130, %1 : vector<8x1024xi32>
    %132 = arith.extui %131 : vector<8x1024xi1> to vector<8x1024xi32>
    %133 = arith.sitofp %132 : vector<8x1024xi32> to vector<8x1024xf32>
    %134 = arith.addf %128, %133 : vector<8x1024xf32>
    %135 = vector.extract_strided_slice %0 {offsets = [0, 22], sizes = [8, 1], strides = [1, 1]} : vector<8x24xi32> to vector<8x1xi32>
    %136 = vector.broadcast %135 : vector<8x1xi32> to vector<8x1024xi32>
    %137 = arith.cmpi eq, %136, %1 : vector<8x1024xi32>
    %138 = arith.extui %137 : vector<8x1024xi1> to vector<8x1024xi32>
    %139 = arith.sitofp %138 : vector<8x1024xi32> to vector<8x1024xf32>
    %140 = arith.addf %134, %139 : vector<8x1024xf32>
    %141 = vector.extract_strided_slice %0 {offsets = [0, 23], sizes = [8, 1], strides = [1, 1]} : vector<8x24xi32> to vector<8x1xi32>
    %142 = vector.broadcast %141 : vector<8x1xi32> to vector<8x1024xi32>
    %143 = arith.cmpi eq, %142, %1 : vector<8x1024xi32>
    %144 = arith.extui %143 : vector<8x1024xi1> to vector<8x1024xi32>
    %145 = arith.sitofp %144 : vector<8x1024xi32> to vector<8x1024xf32>
    %146 = arith.addf %140, %145 : vector<8x1024xf32>
    %c0_1 = arith.constant 0 : index
    %c0_2 = arith.constant 0 : index
    %147 = vector.load %arg2[%c0_1, %c0_2] : memref<1024x128xf32, #tpu.memory_space<vmem>>, vector<1024x128xf32>
    %cst_3 = arith.constant dense<0.000000e+00> : vector<8x128xf32>
    %148 = tpu.matmul %146, %147, %cst_3 {dimension_numbers = #tpu.dot_dimension_numbers<[1], [0], [0], [1], [0, 0, 1, 1], [], []>} : vector<8x1024xf32>, vector<1024x128xf32>, vector<8x128xf32> -> vector<8x128xf32>
    %c0_4 = arith.constant 0 : index
    %c0_5 = arith.constant 0 : index
    %149 = vector.load %arg3[%c0_4, %c0_5] : memref<8x128xf32, #tpu.memory_space<vmem>>, vector<8x128xf32>
    tpu.vector_store %arg3[%c0_4, %c0_5], %148 {strides = array<i32>} : memref<8x128xf32, #tpu.memory_space<vmem>>, vector<8x128xf32>,
    return
  }
  func.func @transform_0(%arg0: i32) -> (i32, i32) {
    %c0_i32 = arith.constant 0 : i32
    %c0_i32_0 = arith.constant 0 : i32
    return %arg0, %c0_i32 : i32, i32
  }
  func.func @transform_1(%arg0: i32) -> (i32, i32) {
    %c0_i32 = arith.constant 0 : i32
    %c0_i32_0 = arith.constant 0 : i32
    %c0_i32_1 = arith.constant 0 : i32
    return %c0_i32, %c0_i32_0 : i32, i32
  }
  func.func @transform_2(%arg0: i32) -> (i32, i32) {
    %c0_i32 = arith.constant 0 : i32
    %c0_i32_0 = arith.constant 0 : i32
    return %arg0, %c0_i32 : i32, i32
  }
}

</mosaic_0001>

<bundles_post_ra>
// kernel: temporal_embedding.1
= control target key start
LH: loop header
LB: loop body
LE: loop exit
PB: predicated region body
PF: predicated region fallthrough
CT: control target
= control target key end

     0   :  { %v1655_v0 = vmov 2   ;;  %v1656_v1 = vmov 0   ;;  %v1657_v3 = vmov 3   ;;  %v1658_v4 = vmov 1   ;;  %s2829_s0 = inlined_call_operand.vmem [shape: s32[8,24], index: 0, kind: input, shape index: {}]   ;;  %s2830_s1 = inlined_call_operand.vmem [shape: f32[1024,128], index: 1, kind: input, shape index: {}]   ;;  %s2831_s2 = inlined_call_operand.vmem [shape: f32[8,128], index: 2, kind: output, shape index: {}]  }
   0x1   :  { %1633 = vset.pattern.permute.xlu1 %v1655_v0  ;;  %1631 = vset.pattern.permute.xlu0 %v1656_v1  ;;  %v1698_v2 = vld [vmem:[%s2829_s0] sm:$0xff]  ;;  %v1659_v5 = vmov 4   ;;  %v1660_v6 = vmov 5   ;;  %v1661_v7 = vmov 6   ;;  %v1662_v8 = vmov 8   ;;  %v892_v25 = vld [vmem:[%s2830_s1 + $0xf8] sm:$0xff] }
   0x2   :  { %92 = vperm.xlu1 %1633, %v1698_v2   ;;  %22 = vperm.xlu0 %1631, %v1698_v2   ;;  %v1663_v9 = vmov 7   ;;  %v1664_v10 = vmov 11   ;;  %v1665_v11 = vmov 9   ;;  %v1666_v12 = vmov 14   ;;  %v924_v26 = vld [vmem:[%s2830_s1 + $0x1f8] sm:$0xff]  ;;  %v891_v29 = vld [vmem:[%s2830_s1 + $0xf0] sm:$0xff] }
   0x3   :  { %v1667_v13 = vmov 10   ;;  %v1668_v14 = vmov 17   ;;  %v1669_v15 = vmov 12   ;;  %v1670_v16 = vmov 20   ;;  %1466 = vmatprep.subr.mxu0 %v892_v25  ;;  %1501 = vmatprep.subr.mxu1 %v924_v26  ;;  %v876_v27 = vld [vmem:[%s2830_s1 + $0x78] sm:$0xff]  ;;  %v923_v30 = vld [vmem:[%s2830_s1 + $0x1f0] sm:$0xff] }
   0x4   :  { %v1671_v17 = vmov 13   ;;  %v1672_v18 = vmov 23   ;;  %v1673_v19 = vmov 15   ;;  %v1674_v20 = vmov 16   ;;  %v908_v28 = vld [vmem:[%s2830_s1 + $0x178] sm:$0xff]  ;;  %1467 = vmatpush3.msra.mxu0 %v876_v27  ;;  %v875_v31 = vld [vmem:[%s2830_s1 + $0x70] sm:$0xff] }
   0x5   :  { %v1675_v21 = vmov 18   ;;  %v1676_v22 = vmov 19   ;;  %v1677_v23 = vmov 21   ;;  %v1678_v24 = vmov 22   ;;  %1502 = vmatpush3.msra.mxu1 %v908_v28  ;;  %1468 = vmatprep.subr.mxu0 %v891_v29  ;;  %v907_v32 = vld [vmem:[%s2830_s1 + $0x170] sm:$0xff]  ;;  %v890_v33 = vld [vmem:[%s2830_s1 + $0xe8] sm:$0xff] }
   0x6   :  { %1634 = vset.pattern.permute.xlu1 %v1657_v3  ;;  %1632 = vset.pattern.permute.xlu0 %v1658_v4  ;;  %v922_v34 = vld [vmem:[%s2830_s1 + $0x1e8] sm:$0xff]  ;;  %v889_v37 = vld [vmem:[%s2830_s1 + $0xe0] sm:$0xff]  ;;  %v888_v41 = vld [vmem:[%s2830_s1 + $0xd8] sm:$0xff]  ;;  %v12_v25 = vlaneseq }
   0x7   :  { %127 = vperm.xlu1 %1634, %v1698_v2   ;;  %57 = vperm.xlu0 %1632, %v1698_v2   ;;  %v874_v35 = vld [vmem:[%s2830_s1 + $0x68] sm:$0xff]  ;;  %v921_v38 = vld [vmem:[%s2830_s1 + $0x1e0] sm:$0xff]  ;;  %v920_v42 = vld [vmem:[%s2830_s1 + $0x1d8] sm:$0xff] }
   0x8   :  { %1503 = vmatprep.subr.mxu1 %v923_v30  ;;  %1469 = vmatpush3.msra.mxu0 %v875_v31  ;;  %v906_v36 = vld [vmem:[%s2830_s1 + $0x168] sm:$0xff]  ;;  %v873_v39 = vld [vmem:[%s2830_s1 + $0x60] sm:$0xff]  ;;  %v872_v43 = vld [vmem:[%s2830_s1 + $0x58] sm:$0xff]  ;;  %v1922_v28 = vand.u32 127, %v12_v25 }
   0x9   :  { %1504 = vmatpush3.msra.mxu1 %v907_v32  ;;  %1470 = vmatprep.subr.mxu0 %v890_v33  ;;  %v905_v40 = vld [vmem:[%s2830_s1 + $0x160] sm:$0xff]  ;;  %v904_v44 = vld [vmem:[%s2830_s1 + $0x158] sm:$0xff]  ;;  %v887_v45 = vld [vmem:[%s2830_s1 + $0xd0] sm:$0xff] }
   0xa   :  { %1505 = vmatprep.subr.mxu1 %v922_v34  ;;  %1471 = vmatpush3.msra.mxu0 %v874_v35  ;;  %v919_v46 = vld [vmem:[%s2830_s1 + $0x1d0] sm:$0xff]  ;;  %v886_v49 = vld [vmem:[%s2830_s1 + $0xc8] sm:$0xff]  ;;  %v885_v53 = vld [vmem:[%s2830_s1 + $0xc0] sm:$0xff]  ;;  %v1925_v29 = vadd.s32 128, %v1922_v28  ;;  %v1928_v30 = vadd.s32 256, %v1922_v28  ;;  %v1931_v31 = vadd.s32 384, %v1922_v28 }
   0xb   :  { %1635 = vset.pattern.permute.xlu1 %v1659_v5  ;;  %1636 = vset.pattern.permute.xlu0 %v1660_v6  ;;  %v871_v47 = vld [vmem:[%s2830_s1 + $0x50] sm:$0xff]  ;;  %v918_v50 = vld [vmem:[%s2830_s1 + $0x1c8] sm:$0xff]  ;;  %v917_v54 = vld [vmem:[%s2830_s1 + $0x1c0] sm:$0xff]  ;;  %v1934_v33 = vadd.s32 512, %v1922_v28  ;;  %v1937_v34 = vadd.s32 640, %v1922_v28  ;;  %v1940_v35 = vadd.s32 768, %v1922_v28 }
   0xc   :  { %162 = vperm.xlu1 %1635, %v1698_v2   ;;  %197 = vperm.xlu0 %1636, %v1698_v2   ;;  %v903_v48 = vld [vmem:[%s2830_s1 + $0x150] sm:$0xff]  ;;  %v870_v51 = vld [vmem:[%s2830_s1 + $0x48] sm:$0xff]  ;;  %v869_v55 = vld [vmem:[%s2830_s1 + $0x40] sm:$0xff] }
   0xd   :  { %1506 = vmatpush3.msra.mxu1 %v906_v36  ;;  %1472 = vmatprep.subr.mxu0 %v889_v37  ;;  %v902_v52 = vld [vmem:[%s2830_s1 + $0x148] sm:$0xff]  ;;  %v901_v56 = vld [vmem:[%s2830_s1 + $0x140] sm:$0xff]  ;;  %v884_v57 = vld [vmem:[%s2830_s1 + $0xb8] sm:$0xff]  ;;  %v1943_v36 = vadd.s32 896, %v1922_v28 }
   0xe   :  { %1507 = vmatprep.subr.mxu1 %v921_v38  ;;  %1473 = vmatpush3.msra.mxu0 %v873_v39  ;;  %v916_v58 = vld [vmem:[%s2830_s1 + $0x1b8] sm:$0xff]  ;;  %v883_v61 = vld [vmem:[%s2830_s1 + $0xb0] sm:$0xff]  ;;  %v882_v1 = vld [vmem:[%s2830_s1 + $0xa8] sm:$0xff]  ;;  %v1679_v38 = vmov 0.0  }
   0xf   :  { %1508 = vmatpush3.msra.mxu1 %v905_v40  ;;  %1474 = vmatprep.subr.mxu0 %v888_v41  ;;  %v868_v59 = vld [vmem:[%s2830_s1 + $0x38] sm:$0xff]  ;;  %v915_v62 = vld [vmem:[%s2830_s1 + $0x1b0] sm:$0xff]  ;;  %v866_v3 = vld [vmem:[%s2830_s1 + $0x28] sm:$0xff] }
  0x10   :  { %1637 = vset.pattern.permute.xlu1 %v1661_v7  ;;  %1639 = vset.pattern.permute.xlu0 %v1662_v8  ;;  %v900_v60 = vld [vmem:[%s2830_s1 + $0x138] sm:$0xff]  ;;  %v867_v63 = vld [vmem:[%s2830_s1 + $0x30] sm:$0xff]  ;;  %v898_v4 = vld [vmem:[%s2830_s1 + $0x128] sm:$0xff] }
  0x11   :  { %232 = vperm.xlu1 %1637, %v1698_v2   ;;  %302 = vperm.xlu0 %1639, %v1698_v2   ;;  %v899_v0 = vld [vmem:[%s2830_s1 + $0x130] sm:$0xff]  ;;  %v881_v5 = vld [vmem:[%s2830_s1 + $0xa0] sm:$0xff]  ;;  %v956_v26 = vld [vmem:[%s2830_s1 + $0x2f8] sm:$0xff] }
  0x12   :  { %1509 = vmatprep.subr.mxu1 %v920_v42  ;;  %1475 = vmatpush3.msra.mxu0 %v872_v43  ;;  %v913_v6 = vld [vmem:[%s2830_s1 + $0x1a0] sm:$0xff]  ;;  %v988_v27 = vld [vmem:[%s2830_s1 + $0x3f8] sm:$0xff] }
  0x13   :  { %1510 = vmatpush3.msra.mxu1 %v904_v44  ;;  %1476 = vmatprep.subr.mxu0 %v887_v45  ;;  %v865_v7 = vld [vmem:[%s2830_s1 + $0x20] sm:$0xff] }
  0x14   :  { %1511 = vmatprep.subr.mxu1 %v919_v46  ;;  %1477 = vmatpush3.msra.mxu0 %v871_v47  ;;  %v897_v8 = vld [vmem:[%s2830_s1 + $0x120] sm:$0xff] }
  0x15   :  { %1638 = vset.pattern.permute.xlu1 %v1663_v9  ;;  %1642 = vset.pattern.permute.xlu0 %v1664_v10  ;;  %v880_v9 = vld [vmem:[%s2830_s1 + $0x98] sm:$0xff] }
  0x16   :  { %267 = vperm.xlu1 %1638, %v1698_v2   ;;  %407 = vperm.xlu0 %1642, %v1698_v2   ;;  %v912_v10 = vld [vmem:[%s2830_s1 + $0x198] sm:$0xff] }
  0x17   :  { %1512 = vmatpush3.msra.mxu1 %v903_v48  ;;  %1478 = vmatprep.subr.mxu0 %v886_v49 }
  0x18   :  { %1513 = vmatprep.subr.mxu1 %v918_v50  ;;  %1479 = vmatpush3.msra.mxu0 %v870_v51 }
  0x19   :  { %1514 = vmatpush3.msra.mxu1 %v902_v52  ;;  %1480 = vmatprep.subr.mxu0 %v885_v53 }
  0x1a   :  { %1640 = vset.pattern.permute.xlu1 %v1665_v11  ;;  %1645 = vset.pattern.permute.xlu0 %v1666_v12  ;;  %v864_v11 = vld [vmem:[%s2830_s1 + $0x18] sm:$0xff] }
  0x1b   :  { %337 = vperm.xlu1 %1640, %v1698_v2   ;;  %512 = vperm.xlu0 %1645, %v1698_v2   ;;  %v896_v12 = vld [vmem:[%s2830_s1 + $0x118] sm:$0xff] }
  0x1c   :  { %1515 = vmatprep.subr.mxu1 %v917_v54  ;;  %1481 = vmatpush3.msra.mxu0 %v869_v55 }
  0x1d   :  { %1516 = vmatpush3.msra.mxu1 %v901_v56  ;;  %1482 = vmatprep.subr.mxu0 %v884_v57 }
  0x1e   :  { %1517 = vmatprep.subr.mxu1 %v916_v58  ;;  %1483 = vmatpush3.msra.mxu0 %v868_v59 }
  0x1f   :  { %1641 = vset.pattern.permute.xlu1 %v1667_v13  ;;  %1648 = vset.pattern.permute.xlu0 %v1668_v14  ;;  %v879_v13 = vld [vmem:[%s2830_s1 + $0x90] sm:$0xff] }
  0x20   :  { %372 = vperm.xlu1 %1641, %v1698_v2   ;;  %617 = vperm.xlu0 %1648, %v1698_v2   ;;  %v911_v14 = vld [vmem:[%s2830_s1 + $0x190] sm:$0xff] }
  0x21   :  { %1518 = vmatpush3.msra.mxu1 %v900_v60  ;;  %1484 = vmatprep.subr.mxu0 %v883_v61 }
  0x22   :  { %1519 = vmatprep.subr.mxu1 %v915_v62  ;;  %1485 = vmatpush3.msra.mxu0 %v867_v63 }
  0x23   :  { %1520 = vmatpush3.msra.mxu1 %v899_v0  ;;  %1486 = vmatprep.subr.mxu0 %v882_v1 }
  0x24   :  { %1643 = vset.pattern.permute.xlu1 %v1669_v15  ;;  %1651 = vset.pattern.permute.xlu0 %v1670_v16  ;;  %v863_v15 = vld [vmem:[%s2830_s1 + $0x10] sm:$0xff] }
  0x25   :  { %442 = vperm.xlu1 %1643, %v1698_v2   ;;  %722 = vperm.xlu0 %1651, %v1698_v2   ;;  %v895_v16 = vld [vmem:[%s2830_s1 + $0x110] sm:$0xff] }
  0x26   :  { %1487 = vmatpush3.msra.mxu0 %v866_v3 }
  0x27   :  { %1488 = vmatprep.subr.mxu0 %v881_v5 }
  0x28   :  { %1489 = vmatpush3.msra.mxu0 %v865_v7 }
  0x29   :  { %1644 = vset.pattern.permute.xlu1 %v1671_v17  ;;  %1654 = vset.pattern.permute.xlu0 %v1672_v18  ;;  %v878_v17 = vld [vmem:[%s2830_s1 + $0x88] sm:$0xff] }
  0x2a   :  { %477 = vperm.xlu1 %1644, %v1698_v2   ;;  %827 = vperm.xlu0 %1654, %v1698_v2   ;;  %v910_v18 = vld [vmem:[%s2830_s1 + $0x188] sm:$0xff] }
  0x2b   :  { %1490 = vmatprep.subr.mxu0 %v880_v9 }
  0x2c   :  { %1491 = vmatpush3.msra.mxu0 %v864_v11 }
  0x2d   :  { %1492 = vmatprep.subr.mxu0 %v879_v13 }
  0x2e   :  { %1646 = vset.pattern.permute.xlu1 %v1673_v19  ;;  %v862_v19 = vld [vmem:[%s2830_s1 + $0x8] sm:$0xff]  ;;  %1493 = vmatpush3.msra.mxu0 %v863_v15 }
  0x2f   :  { %547 = vperm.xlu1 %1646, %v1698_v2   ;;  %1494 = vmatprep.subr.mxu0 %v878_v17 }
  0x30   :  { %1495 = vmatpush3.msra.mxu0 %v862_v19 }
  0x33   :  { %1647 = vset.pattern.permute.xlu1 %v1674_v20  ;;  %v894_v20 = vld [vmem:[%s2830_s1 + $0x108] sm:$0xff] }
  0x34   :  { %582 = vperm.xlu1 %1647, %v1698_v2  }
  0x38   :  { %1649 = vset.pattern.permute.xlu1 %v1675_v21  ;;  %v877_v21 = vld [vmem:[%s2830_s1 + $0x80] sm:$0xff] }
  0x39   :  { %652 = vperm.xlu1 %1649, %v1698_v2   ;;  %1496 = vmatprep.subr.mxu0 %v877_v21 }
  0x3d   :  { %1650 = vset.pattern.permute.xlu1 %v1676_v22  ;;  %v909_v22 = vld [vmem:[%s2830_s1 + $0x180] sm:$0xff] }
  0x3e   :  { %687 = vperm.xlu1 %1650, %v1698_v2  }
  0x42   :  { %1652 = vset.pattern.permute.xlu1 %v1677_v23  ;;  %v861_v23 = vld [vmem:[%s2830_s1] sm:$0xff] }
  0x43   :  { %757 = vperm.xlu1 %1652, %v1698_v2   ;;  %1497 = vmatpush3.msra.mxu0 %v861_v23 }
  0x44   :  { %1536 = vmatprep.subr.mxu0 %v956_v26 }
  0x47   :  { %1653 = vset.pattern.permute.xlu1 %v1678_v24  ;;  %v893_v24 = vld [vmem:[%s2830_s1 + $0x100] sm:$0xff] }
  0x48   :  { %792 = vperm.xlu1 %1653, %v1698_v2   ;;  %v914_v2 = vld [vmem:[%s2830_s1 + $0x1a8] sm:$0xff] }
  0x49   :  { %1521 = vmatprep.subr.mxu1 %v914_v2 }
  0x4a   :  { %1522 = vmatpush3.msra.mxu1 %v898_v4 }
  0x4b   :  { %1523 = vmatprep.subr.mxu1 %v913_v6 }
  0x4c   :  { %1524 = vmatpush3.msra.mxu1 %v897_v8 }
  0x4d   :  { %1525 = vmatprep.subr.mxu1 %v912_v10 }
  0x4e   :  { %1526 = vmatpush3.msra.mxu1 %v896_v12 }
  0x4f   :  { %1527 = vmatprep.subr.mxu1 %v911_v14 }
  0x50   :  { %1528 = vmatpush3.msra.mxu1 %v895_v16 }
  0x51   :  { %1529 = vmatprep.subr.mxu1 %v910_v18 }
  0x52   :  { %1530 = vmatpush3.msra.mxu1 %v894_v20 }
  0x53   :  { %1531 = vmatprep.subr.mxu1 %v909_v22 }
  0x54   :  { %1532 = vmatpush3.msra.mxu1 %v893_v24 }
  0x55   :  { %1571 = vmatprep.subr.mxu1 %v988_v27 }
  0x7d   :  { %v93_v32 = vpop.permute.xlu1 %92  ;;  %v23_v37 = vpop.permute.xlu0 %22 }
  0x7e   :  { %vm94_vm0 = vcmp.eq.s32.totalorder %v93_v32, %v1922_v28  ;;  %vm95_vm1 = vcmp.eq.s32.totalorder %v93_v32, %v1925_v29  ;;  %vm96_vm2 = vcmp.eq.s32.totalorder %v93_v32, %v1928_v30  ;;  %vm97_vm3 = vcmp.eq.s32.totalorder %v93_v32, %v1931_v31 }
  0x7f   :  { %vm98_vm4 = vcmp.eq.s32.totalorder %v93_v32, %v1934_v33  ;;  %vm99_vm5 = vcmp.eq.s32.totalorder %v93_v32, %v1937_v34  ;;  %vm100_vm6 = vcmp.eq.s32.totalorder %v93_v32, %v1940_v35  ;;  %vm101_vm7 = vcmp.eq.s32.totalorder %v93_v32, %v1943_v36 }
  0x80   :  { %v1290_v39 = vsel %vm94_vm0, 1.0, %v1679_v38  ;;  %v1291_v40 = vsel %vm95_vm1, 1.0, %v1679_v38  ;;  %v1292_v41 = vsel %vm96_vm2, 1.0, %v1679_v38  ;;  %v1957_v42 = vsel %vm97_vm3, 1.0, %v1679_v38 }
  0x81   :  { %vm24_vm8 = vcmp.eq.s32.totalorder %v23_v37, %v1922_v28  ;;  %vm25_vm9 = vcmp.eq.s32.totalorder %v23_v37, %v1925_v29  ;;  %vm26_vm10 = vcmp.eq.s32.totalorder %v23_v37, %v1928_v30  ;;  %vm27_vm11 = vcmp.eq.s32.totalorder %v23_v37, %v1931_v31 }
  0x82   :  { %vm28_vm12 = vcmp.eq.s32.totalorder %v23_v37, %v1934_v33  ;;  %vm29_vm13 = vcmp.eq.s32.totalorder %v23_v37, %v1937_v34  ;;  %vm30_vm14 = vcmp.eq.s32.totalorder %v23_v37, %v1940_v35  ;;  %v1294_v43 = vsel %vm98_vm4, 1.0, %v1679_v38  ;;  %v128_v46 = vpop.permute.xlu1 %127  ;;  %v58_v51 = vpop.permute.xlu0 %57 }
  0x83   :  { %v1295_v44 = vsel %vm99_vm5, 1.0, %v1679_v38  ;;  %v1296_v45 = vsel %vm100_vm6, 1.0, %v1679_v38  ;;  %vm31_vm15 = vcmp.eq.s32.totalorder %v23_v37, %v1943_v36  ;;  %v1297_v47 = vsel %vm101_vm7, 1.0, %v1679_v38 }
  0x84   :  { %v1274_v48 = vsel %vm24_vm8, 1.0, %v1679_v38  ;;  %v1275_v49 = vsel %vm25_vm9, 1.0, %v1679_v38  ;;  %v1276_v50 = vsel %vm26_vm10, 1.0, %v1679_v38  ;;  %v1277_v52 = vsel %vm27_vm11, 1.0, %v1679_v38 }
  0x85   :  { %v1278_v53 = vsel %vm28_vm12, 1.0, %v1679_v38  ;;  %v1279_v54 = vsel %vm29_vm13, 1.0, %v1679_v38  ;;  %v1280_v55 = vsel %vm30_vm14, 1.0, %v1679_v38  ;;  %v1281_v56 = vsel %vm31_vm15, 1.0, %v1679_v38 }
  0x86   :  { %vm129_vm0 = vcmp.eq.s32.totalorder %v128_v46, %v1922_v28  ;;  %vm130_vm1 = vcmp.eq.s32.totalorder %v128_v46, %v1925_v29  ;;  %vm131_vm2 = vcmp.eq.s32.totalorder %v128_v46, %v1928_v30  ;;  %vm59_vm3 = vcmp.eq.s32.totalorder %v58_v51, %v1922_v28 }
  0x87   :  { %vm60_vm4 = vcmp.eq.s32.totalorder %v58_v51, %v1925_v29  ;;  %vm61_vm5 = vcmp.eq.s32.totalorder %v58_v51, %v1928_v30  ;;  %vm62_vm6 = vcmp.eq.s32.totalorder %v58_v51, %v1931_v31  ;;  %vm63_vm7 = vcmp.eq.s32.totalorder %v58_v51, %v1934_v33  ;;  %v163_v16 = vpop.permute.xlu1 %162 }
  0x88   :  { %vm64_vm8 = vcmp.eq.s32.totalorder %v58_v51, %v1937_v34  ;;  %vm65_vm9 = vcmp.eq.s32.totalorder %v58_v51, %v1940_v35  ;;  %vm66_vm10 = vcmp.eq.s32.totalorder %v58_v51, %v1943_v36  ;;  %v1282_v57 = vsel %vm59_vm3, 1.0, %v1679_v38 }
  0x89   :  { %v1283_v58 = vsel %vm60_vm4, 1.0, %v1679_v38  ;;  %v1284_v59 = vsel %vm61_vm5, 1.0, %v1679_v38  ;;  %v1285_v60 = vsel %vm62_vm6, 1.0, %v1679_v38  ;;  %vm132_vm11 = vcmp.eq.s32.totalorder %v128_v46, %v1931_v31 }
  0x8a   :  { %v1286_v61 = vsel %vm63_vm7, 1.0, %v1679_v38  ;;  %v1287_v62 = vsel %vm64_vm8, 1.0, %v1679_v38  ;;  %v1288_v63 = vsel %vm65_vm9, 1.0, %v1679_v38  ;;  %v1289_v0 = vsel %vm66_vm10, 1.0, %v1679_v38 }
  0x8b   :  { %v83_v1 = vadd.f32 %v1282_v57, %v1274_v48  ;;  %v84_v2 = vadd.f32 %v1283_v58, %v1275_v49  ;;  %v85_v3 = vadd.f32 %v1284_v59, %v1276_v50  ;;  %vm133_vm12 = vcmp.eq.s32.totalorder %v128_v46, %v1934_v33 }
  0x8c   :  { %vm134_vm13 = vcmp.eq.s32.totalorder %v128_v46, %v1937_v34  ;;  %vm135_vm14 = vcmp.eq.s32.totalorder %v128_v46, %v1940_v35  ;;  %v86_v4 = vadd.f32 %v1285_v60, %v1277_v52  ;;  %vm136_vm15 = vcmp.eq.s32.totalorder %v128_v46, %v1943_v36 }
  0x8d   :  { %v87_v5 = vadd.f32 %v1286_v61, %v1278_v53  ;;  %v88_v6 = vadd.f32 %v1287_v62, %v1279_v54  ;;  %v89_v7 = vadd.f32 %v1288_v63, %v1280_v55  ;;  %v1298_v8 = vsel %vm129_vm0, 1.0, %v1679_v38  ;;  %v233_v54 = vpop.permute.xlu1 %232 }
  0x8e   :  { %v1299_v9 = vsel %vm130_vm1, 1.0, %v1679_v38  ;;  %v90_v10 = vadd.f32 %v1289_v0, %v1281_v56  ;;  %v118_v11 = vadd.f32 %v1290_v39, %v83_v1  ;;  %v1300_v12 = vsel %vm131_vm2, 1.0, %v1679_v38 }
  0x8f   :  { %v1301_v13 = vsel %vm132_vm11, 1.0, %v1679_v38  ;;  %v119_v14 = vadd.f32 %v1291_v40, %v84_v2  ;;  %v120_v15 = vadd.f32 %v1292_v41, %v85_v3  ;;  %v1302_v17 = vsel %vm133_vm12, 1.0, %v1679_v38 }
  0x90   :  { %v1303_v18 = vsel %vm134_vm13, 1.0, %v1679_v38  ;;  %v1304_v19 = vsel %vm135_vm14, 1.0, %v1679_v38  ;;  %v121_v20 = vadd.f32 %v1957_v42, %v86_v4  ;;  %v1305_v21 = vsel %vm136_vm15, 1.0, %v1679_v38  ;;  %v198_v42 = vpop.permute.xlu0 %197 }
  0x91   :  { %v122_v22 = vadd.f32 %v1294_v43, %v87_v5  ;;  %v123_v23 = vadd.f32 %v1295_v44, %v88_v6  ;;  %v124_v24 = vadd.f32 %v1296_v45, %v89_v7  ;;  %v125_v25 = vadd.f32 %v1297_v47, %v90_v10  ;;  %v268_v6 = vpop.permute.xlu1 %267 }
  0x92   :  { %v153_v26 = vadd.f32 %v1298_v8, %v118_v11  ;;  %vm164_vm0 = vcmp.eq.s32.totalorder %v163_v16, %v1922_v28  ;;  %vm165_vm1 = vcmp.eq.s32.totalorder %v163_v16, %v1925_v29  ;;  %v154_v27 = vadd.f32 %v1299_v9, %v119_v14 }
  0x93   :  { %v155_v32 = vadd.f32 %v1300_v12, %v120_v15  ;;  %vm166_vm2 = vcmp.eq.s32.totalorder %v163_v16, %v1928_v30  ;;  %vm167_vm3 = vcmp.eq.s32.totalorder %v163_v16, %v1931_v31  ;;  %v156_v37 = vadd.f32 %v1301_v13, %v121_v20 }
  0x94   :  { %vm168_vm4 = vcmp.eq.s32.totalorder %v163_v16, %v1934_v33  ;;  %vm169_vm5 = vcmp.eq.s32.totalorder %v163_v16, %v1937_v34  ;;  %vm170_vm6 = vcmp.eq.s32.totalorder %v163_v16, %v1940_v35  ;;  %v157_v39 = vadd.f32 %v1302_v17, %v122_v22 }
  0x95   :  { %vm171_vm7 = vcmp.eq.s32.totalorder %v163_v16, %v1943_v36  ;;  %v1306_v40 = vsel %vm164_vm0, 1.0, %v1679_v38  ;;  %v1307_v41 = vsel %vm165_vm1, 1.0, %v1679_v38  ;;  %v158_v43 = vadd.f32 %v1303_v18, %v123_v23 }
  0x96   :  { %v159_v44 = vadd.f32 %v1304_v19, %v124_v24  ;;  %v1308_v45 = vsel %vm166_vm2, 1.0, %v1679_v38  ;;  %v1309_v46 = vsel %vm167_vm3, 1.0, %v1679_v38  ;;  %v160_v47 = vadd.f32 %v1305_v21, %v125_v25  ;;  %v2085_v24 = vpop.permute.xlu1 %337 }
  0x97   :  { %v1310_v48 = vsel %vm168_vm4, 1.0, %v1679_v38  ;;  %v1311_v49 = vsel %vm169_vm5, 1.0, %v1679_v38  ;;  %v1312_v50 = vsel %vm170_vm6, 1.0, %v1679_v38  ;;  %v1313_v51 = vsel %vm171_vm7, 1.0, %v1679_v38 }
  0x98   :  { %v188_v52 = vadd.f32 %v1306_v40, %v153_v26  ;;  %v189_v53 = vadd.f32 %v1307_v41, %v154_v27  ;;  %vm199_vm8 = vcmp.eq.s32.totalorder %v198_v42, %v1922_v28  ;;  %v190_v55 = vadd.f32 %v1308_v45, %v155_v32 }
  0x99   :  { %v191_v56 = vadd.f32 %v1309_v46, %v156_v37  ;;  %vm200_vm9 = vcmp.eq.s32.totalorder %v198_v42, %v1925_v29  ;;  %vm201_vm10 = vcmp.eq.s32.totalorder %v198_v42, %v1928_v30  ;;  %vm202_vm11 = vcmp.eq.s32.totalorder %v198_v42, %v1931_v31 }
  0x9a   :  { %vm203_vm12 = vcmp.eq.s32.totalorder %v198_v42, %v1934_v33  ;;  %vm204_vm13 = vcmp.eq.s32.totalorder %v198_v42, %v1937_v34  ;;  %vm205_vm14 = vcmp.eq.s32.totalorder %v198_v42, %v1940_v35  ;;  %v192_v57 = vadd.f32 %v1310_v48, %v157_v39  ;;  %v303_v39 = vpop.permute.xlu0 %302 }
  0x9b   :  { %v193_v58 = vadd.f32 %v1311_v49, %v158_v43  ;;  %vm206_vm15 = vcmp.eq.s32.totalorder %v198_v42, %v1943_v36  ;;  %v1314_v59 = vsel %vm199_vm8, 1.0, %v1679_v38  ;;  %v194_v60 = vadd.f32 %v1312_v50, %v159_v44  ;;  %v2104_v50 = vpop.permute.xlu1 %372 }
  0x9c   :  { %v195_v61 = vadd.f32 %v1313_v51, %v160_v47  ;;  %v1315_v62 = vsel %vm200_vm9, 1.0, %v1679_v38  ;;  %v1316_v63 = vsel %vm201_vm10, 1.0, %v1679_v38  ;;  %v1317_v0 = vsel %vm202_vm11, 1.0, %v1679_v38 }
  0x9d   :  { %v1318_v1 = vsel %vm203_vm12, 1.0, %v1679_v38  ;;  %v1319_v2 = vsel %vm204_vm13, 1.0, %v1679_v38  ;;  %v1320_v3 = vsel %vm205_vm14, 1.0, %v1679_v38  ;;  %v1321_v4 = vsel %vm206_vm15, 1.0, %v1679_v38 }
  0x9e   :  { %v223_v5 = vadd.f32 %v1314_v59, %v188_v52  ;;  %vm234_vm0 = vcmp.eq.s32.totalorder %v233_v54, %v1922_v28  ;;  %vm235_vm1 = vcmp.eq.s32.totalorder %v233_v54, %v1925_v29  ;;  %v224_v7 = vadd.f32 %v1315_v62, %v189_v53 }
  0x9f   :  { %v225_v8 = vadd.f32 %v1316_v63, %v190_v55  ;;  %vm236_vm2 = vcmp.eq.s32.totalorder %v233_v54, %v1928_v30  ;;  %vm237_vm3 = vcmp.eq.s32.totalorder %v233_v54, %v1931_v31  ;;  %v226_v9 = vadd.f32 %v1317_v0, %v191_v56 }
  0xa0   :  { %vm238_vm4 = vcmp.eq.s32.totalorder %v233_v54, %v1934_v33  ;;  %vm239_vm5 = vcmp.eq.s32.totalorder %v233_v54, %v1937_v34  ;;  %vm240_vm6 = vcmp.eq.s32.totalorder %v233_v54, %v1940_v35  ;;  %v227_v10 = vadd.f32 %v1318_v1, %v192_v57 }
  0xa1   :  { %vm241_vm7 = vcmp.eq.s32.totalorder %v233_v54, %v1943_v36  ;;  %v1322_v11 = vsel %vm234_vm0, 1.0, %v1679_v38  ;;  %v1323_v12 = vsel %vm235_vm1, 1.0, %v1679_v38  ;;  %v228_v13 = vadd.f32 %v1319_v2, %v193_v58 }
  0xa2   :  { %v229_v14 = vadd.f32 %v1320_v3, %v194_v60  ;;  %v1324_v15 = vsel %vm236_vm2, 1.0, %v1679_v38  ;;  %v1325_v16 = vsel %vm237_vm3, 1.0, %v1679_v38  ;;  %v230_v17 = vadd.f32 %v1321_v4, %v195_v61  ;;  %v2122_v4 = vpop.permute.xlu1 %442 }
  0xa3   :  { %v1326_v18 = vsel %vm238_vm4, 1.0, %v1679_v38  ;;  %v1327_v19 = vsel %vm239_vm5, 1.0, %v1679_v38  ;;  %v1328_v20 = vsel %vm240_vm6, 1.0, %v1679_v38  ;;  %v1329_v21 = vsel %vm241_vm7, 1.0, %v1679_v38 }
  0xa4   :  { %v258_v22 = vadd.f32 %v1322_v11, %v223_v5  ;;  %v259_v23 = vadd.f32 %v1323_v12, %v224_v7  ;;  %vm269_vm8 = vcmp.eq.s32.totalorder %v268_v6, %v1922_v28  ;;  %v260_v25 = vadd.f32 %v1324_v15, %v225_v8 }
  0xa5   :  { %v261_v26 = vadd.f32 %v1325_v16, %v226_v9  ;;  %vm270_vm9 = vcmp.eq.s32.totalorder %v268_v6, %v1925_v29  ;;  %vm271_vm10 = vcmp.eq.s32.totalorder %v268_v6, %v1928_v30  ;;  %vm272_vm11 = vcmp.eq.s32.totalorder %v268_v6, %v1931_v31 }
  0xa6   :  { %vm273_vm12 = vcmp.eq.s32.totalorder %v268_v6, %v1934_v33  ;;  %vm274_vm13 = vcmp.eq.s32.totalorder %v268_v6, %v1937_v34  ;;  %vm275_vm14 = vcmp.eq.s32.totalorder %v268_v6, %v1940_v35  ;;  %v262_v27 = vadd.f32 %v1326_v18, %v227_v10 }
  0xa7   :  { %v263_v32 = vadd.f32 %v1327_v19, %v228_v13  ;;  %vm276_vm15 = vcmp.eq.s32.totalorder %v268_v6, %v1943_v36  ;;  %v1330_v37 = vsel %vm269_vm8, 1.0, %v1679_v38  ;;  %v264_v40 = vadd.f32 %v1328_v20, %v229_v14  ;;  %v2150_v20 = vpop.permute.xlu1 %477 }
  0xa8   :  { %v265_v41 = vadd.f32 %v1329_v21, %v230_v17  ;;  %v1331_v42 = vsel %vm270_vm9, 1.0, %v1679_v38  ;;  %v1332_v43 = vsel %vm271_vm10, 1.0, %v1679_v38  ;;  %v1333_v44 = vsel %vm272_vm11, 1.0, %v1679_v38 }
  0xa9   :  { %v1334_v45 = vsel %vm273_vm12, 1.0, %v1679_v38  ;;  %v1335_v46 = vsel %vm274_vm13, 1.0, %v1679_v38  ;;  %v1336_v47 = vsel %vm275_vm14, 1.0, %v1679_v38  ;;  %v1337_v48 = vsel %vm276_vm15, 1.0, %v1679_v38 }
  0xaa   :  { %v293_v49 = vadd.f32 %v1330_v37, %v258_v22  ;;  %vm304_vm0 = vcmp.eq.s32.totalorder %v303_v39, %v1922_v28  ;;  %vm305_vm1 = vcmp.eq.s32.totalorder %v303_v39, %v1925_v29  ;;  %v294_v51 = vadd.f32 %v1331_v42, %v259_v23 }
  0xab   :  { %v295_v52 = vadd.f32 %v1332_v43, %v260_v25  ;;  %vm306_vm2 = vcmp.eq.s32.totalorder %v303_v39, %v1928_v30  ;;  %vm307_vm3 = vcmp.eq.s32.totalorder %v303_v39, %v1931_v31  ;;  %v296_v53 = vadd.f32 %v1333_v44, %v261_v26 }
  0xac   :  { %vm308_vm4 = vcmp.eq.s32.totalorder %v303_v39, %v1934_v33  ;;  %vm309_vm5 = vcmp.eq.s32.totalorder %v303_v39, %v1937_v34  ;;  %vm310_vm6 = vcmp.eq.s32.totalorder %v303_v39, %v1940_v35  ;;  %v297_v54 = vadd.f32 %v1334_v45, %v262_v27  ;;  %v408_v27 = vpop.permute.xlu0 %407 }
  0xad   :  { %vm311_vm7 = vcmp.eq.s32.totalorder %v303_v39, %v1943_v36  ;;  %v1338_v55 = vsel %vm304_vm0, 1.0, %v1679_v38  ;;  %v1339_v56 = vsel %vm305_vm1, 1.0, %v1679_v38  ;;  %v298_v57 = vadd.f32 %v1335_v46, %v263_v32 }
  0xae   :  { %v299_v58 = vadd.f32 %v1336_v47, %v264_v40  ;;  %v1340_v59 = vsel %vm306_vm2, 1.0, %v1679_v38  ;;  %v1341_v60 = vsel %vm307_vm3, 1.0, %v1679_v38  ;;  %v300_v61 = vadd.f32 %v1337_v48, %v265_v41  ;;  %v2173_v48 = vpop.permute.xlu1 %547 }
  0xaf   :  { %v1342_v62 = vsel %vm308_vm4, 1.0, %v1679_v38  ;;  %v1343_v63 = vsel %vm309_vm5, 1.0, %v1679_v38  ;;  %v1344_v0 = vsel %vm310_vm6, 1.0, %v1679_v38  ;;  %v1345_v1 = vsel %vm311_vm7, 1.0, %v1679_v38 }
  0xb0   :  { %v328_v2 = vadd.f32 %v1338_v55, %v293_v49  ;;  %v329_v3 = vadd.f32 %v1339_v56, %v294_v51  ;;  %vm339_vm8 = vcmp.eq.s32.totalorder %v2085_v24, %v1922_v28  ;;  %v330_v5 = vadd.f32 %v1340_v59, %v295_v52 }
  0xb1   :  { %v331_v6 = vadd.f32 %v1341_v60, %v296_v53  ;;  %vm340_vm9 = vcmp.eq.s32.totalorder %v2085_v24, %v1925_v29  ;;  %vm341_vm10 = vcmp.eq.s32.totalorder %v2085_v24, %v1928_v30  ;;  %vm342_vm11 = vcmp.eq.s32.totalorder %v2085_v24, %v1931_v31 }
  0xb2   :  { %vm343_vm12 = vcmp.eq.s32.totalorder %v2085_v24, %v1934_v33  ;;  %vm344_vm13 = vcmp.eq.s32.totalorder %v2085_v24, %v1937_v34  ;;  %vm345_vm14 = vcmp.eq.s32.totalorder %v2085_v24, %v1940_v35  ;;  %v332_v7 = vadd.f32 %v1342_v62, %v297_v54 }
  0xb3   :  { %v333_v8 = vadd.f32 %v1343_v63, %v298_v57  ;;  %vm346_vm15 = vcmp.eq.s32.totalorder %v2085_v24, %v1943_v36  ;;  %v1346_v9 = vsel %vm339_vm8, 1.0, %v1679_v38  ;;  %v334_v10 = vadd.f32 %v1344_v0, %v299_v58  ;;  %v2194_v0 = vpop.permute.xlu1 %582 }
  0xb4   :  { %v335_v11 = vadd.f32 %v1345_v1, %v300_v61  ;;  %v1347_v12 = vsel %vm340_vm9, 1.0, %v1679_v38  ;;  %v1348_v13 = vsel %vm341_vm10, 1.0, %v1679_v38  ;;  %v1349_v14 = vsel %vm342_vm11, 1.0, %v1679_v38 }
  0xb5   :  { %v1350_v15 = vsel %vm343_vm12, 1.0, %v1679_v38  ;;  %v1351_v16 = vsel %vm344_vm13, 1.0, %v1679_v38  ;;  %v1352_v17 = vsel %vm345_vm14, 1.0, %v1679_v38  ;;  %v1353_v18 = vsel %vm346_vm15, 1.0, %v1679_v38 }
  0xb6   :  { %v363_v19 = vadd.f32 %v1346_v9, %v328_v2  ;;  %vm374_vm0 = vcmp.eq.s32.totalorder %v2104_v50, %v1922_v28  ;;  %vm375_vm1 = vcmp.eq.s32.totalorder %v2104_v50, %v1925_v29  ;;  %v364_v21 = vadd.f32 %v1347_v12, %v329_v3 }
  0xb7   :  { %v365_v22 = vadd.f32 %v1348_v13, %v330_v5  ;;  %vm376_vm2 = vcmp.eq.s32.totalorder %v2104_v50, %v1928_v30  ;;  %vm377_vm3 = vcmp.eq.s32.totalorder %v2104_v50, %v1931_v31  ;;  %v366_v23 = vadd.f32 %v1349_v14, %v331_v6 }
  0xb8   :  { %vm378_vm4 = vcmp.eq.s32.totalorder %v2104_v50, %v1934_v33  ;;  %vm379_vm5 = vcmp.eq.s32.totalorder %v2104_v50, %v1937_v34  ;;  %vm380_vm6 = vcmp.eq.s32.totalorder %v2104_v50, %v1940_v35  ;;  %v367_v24 = vadd.f32 %v1350_v15, %v332_v7 }
  0xb9   :  { %vm381_vm7 = vcmp.eq.s32.totalorder %v2104_v50, %v1943_v36  ;;  %v1354_v25 = vsel %vm374_vm0, 1.0, %v1679_v38  ;;  %v1355_v26 = vsel %vm375_vm1, 1.0, %v1679_v38  ;;  %v368_v32 = vadd.f32 %v1351_v16, %v333_v8 }
  0xba   :  { %v369_v37 = vadd.f32 %v1352_v17, %v334_v10  ;;  %v1356_v39 = vsel %vm376_vm2, 1.0, %v1679_v38  ;;  %v1357_v40 = vsel %vm377_vm3, 1.0, %v1679_v38  ;;  %v370_v41 = vadd.f32 %v1353_v18, %v335_v11  ;;  %v2220_v18 = vpop.permute.xlu1 %652 }
  0xbb   :  { %v1358_v42 = vsel %vm378_vm4, 1.0, %v1679_v38  ;;  %v1359_v43 = vsel %vm379_vm5, 1.0, %v1679_v38  ;;  %v1360_v44 = vsel %vm380_vm6, 1.0, %v1679_v38  ;;  %v1361_v45 = vsel %vm381_vm7, 1.0, %v1679_v38 }
  0xbc   :  { %v398_v46 = vadd.f32 %v1354_v25, %v363_v19  ;;  %v399_v47 = vadd.f32 %v1355_v26, %v364_v21  ;;  %vm409_vm8 = vcmp.eq.s32.totalorder %v408_v27, %v1922_v28  ;;  %v400_v49 = vadd.f32 %v1356_v39, %v365_v22  ;;  %v2239_v25 = vpop.permute.xlu0 %512 }
  0xbd   :  { %v401_v50 = vadd.f32 %v1357_v40, %v366_v23  ;;  %vm410_vm9 = vcmp.eq.s32.totalorder %v408_v27, %v1925_v29  ;;  %vm411_vm10 = vcmp.eq.s32.totalorder %v408_v27, %v1928_v30  ;;  %vm412_vm11 = vcmp.eq.s32.totalorder %v408_v27, %v1931_v31 }
  0xbe   :  { %vm413_vm12 = vcmp.eq.s32.totalorder %v408_v27, %v1934_v33  ;;  %vm414_vm13 = vcmp.eq.s32.totalorder %v408_v27, %v1937_v34  ;;  %vm415_vm14 = vcmp.eq.s32.totalorder %v408_v27, %v1940_v35  ;;  %v402_v51 = vadd.f32 %v1358_v42, %v367_v24 }
  0xbf   :  { %v403_v52 = vadd.f32 %v1359_v43, %v368_v32  ;;  %vm416_vm15 = vcmp.eq.s32.totalorder %v408_v27, %v1943_v36  ;;  %v1362_v53 = vsel %vm409_vm8, 1.0, %v1679_v38  ;;  %v404_v54 = vadd.f32 %v1360_v44, %v369_v37  ;;  %v2254_v44 = vpop.permute.xlu1 %687 }
  0xc0   :  { %v405_v55 = vadd.f32 %v1361_v45, %v370_v41  ;;  %v1363_v56 = vsel %vm410_vm9, 1.0, %v1679_v38  ;;  %v1364_v57 = vsel %vm411_vm10, 1.0, %v1679_v38  ;;  %v1365_v58 = vsel %vm412_vm11, 1.0, %v1679_v38 }
  0xc1   :  { %v1366_v59 = vsel %vm413_vm12, 1.0, %v1679_v38  ;;  %v1367_v60 = vsel %vm414_vm13, 1.0, %v1679_v38  ;;  %v1368_v61 = vsel %vm415_vm14, 1.0, %v1679_v38  ;;  %v1369_v62 = vsel %vm416_vm15, 1.0, %v1679_v38 }
  0xc2   :  { %v433_v63 = vadd.f32 %v1362_v53, %v398_v46  ;;  %vm444_vm0 = vcmp.eq.s32.totalorder %v2122_v4, %v1922_v28  ;;  %vm445_vm1 = vcmp.eq.s32.totalorder %v2122_v4, %v1925_v29  ;;  %v434_v1 = vadd.f32 %v1363_v56, %v399_v47 }
  0xc3   :  { %v435_v2 = vadd.f32 %v1364_v57, %v400_v49  ;;  %vm446_vm2 = vcmp.eq.s32.totalorder %v2122_v4, %v1928_v30  ;;  %vm447_vm3 = vcmp.eq.s32.totalorder %v2122_v4, %v1931_v31  ;;  %v436_v3 = vadd.f32 %v1365_v58, %v401_v50  ;;  %v2272_v57 = vpop.permute.xlu0 %617 }
  0xc4   :  { %vm448_vm4 = vcmp.eq.s32.totalorder %v2122_v4, %v1934_v33  ;;  %vm449_vm5 = vcmp.eq.s32.totalorder %v2122_v4, %v1937_v34  ;;  %vm450_vm6 = vcmp.eq.s32.totalorder %v2122_v4, %v1940_v35  ;;  %v437_v5 = vadd.f32 %v1366_v59, %v402_v51 }
  0xc5   :  { %vm451_vm7 = vcmp.eq.s32.totalorder %v2122_v4, %v1943_v36  ;;  %v1370_v6 = vsel %vm444_vm0, 1.0, %v1679_v38  ;;  %v1371_v7 = vsel %vm445_vm1, 1.0, %v1679_v38  ;;  %v438_v8 = vadd.f32 %v1367_v60, %v403_v52  ;;  %v2290_v60 = vpop.permute.xlu1 %757 }
  0xc6   :  { %v439_v9 = vadd.f32 %v1368_v61, %v404_v54  ;;  %v1372_v10 = vsel %vm446_vm2, 1.0, %v1679_v38  ;;  %v1373_v11 = vsel %vm447_vm3, 1.0, %v1679_v38  ;;  %v440_v12 = vadd.f32 %v1369_v62, %v405_v55 }
  0xc7   :  { %v1374_v13 = vsel %vm448_vm4, 1.0, %v1679_v38  ;;  %v1375_v14 = vsel %vm449_vm5, 1.0, %v1679_v38  ;;  %v1376_v15 = vsel %vm450_vm6, 1.0, %v1679_v38  ;;  %v1377_v16 = vsel %vm451_vm7, 1.0, %v1679_v38 }
  0xc8   :  { %v468_v4 = vadd.f32 %v1370_v6, %v433_v63  ;;  %v2216_v17 = vadd.f32 %v1371_v7, %v434_v1  ;;  %vm479_vm8 = vcmp.eq.s32.totalorder %v2150_v20, %v1922_v28  ;;  %v470_v19 = vadd.f32 %v1372_v10, %v435_v2  ;;  %v2305_v6 = vpop.permute.xlu0 %722 }
  0xc9   :  { %v2222_v21 = vadd.f32 %v1373_v11, %v436_v3  ;;  %vm480_vm9 = vcmp.eq.s32.totalorder %v2150_v20, %v1925_v29  ;;  %vm481_vm10 = vcmp.eq.s32.totalorder %v2150_v20, %v1928_v30  ;;  %vm482_vm11 = vcmp.eq.s32.totalorder %v2150_v20, %v1931_v31 }
  0xca   :  { %vm483_vm12 = vcmp.eq.s32.totalorder %v2150_v20, %v1934_v33  ;;  %vm484_vm13 = vcmp.eq.s32.totalorder %v2150_v20, %v1937_v34  ;;  %vm485_vm14 = vcmp.eq.s32.totalorder %v2150_v20, %v1940_v35  ;;  %v472_v22 = vadd.f32 %v1374_v13, %v437_v5 }
  0xcb   :  { %v473_v23 = vadd.f32 %v1375_v14, %v438_v8  ;;  %vm486_vm15 = vcmp.eq.s32.totalorder %v2150_v20, %v1943_v36  ;;  %v1378_v24 = vsel %vm479_vm8, 1.0, %v1679_v38  ;;  %v474_v26 = vadd.f32 %v1376_v15, %v439_v9  ;;  %v2334_v15 = vpop.permute.xlu1 %792 }
  0xcc   :  { %v475_v27 = vadd.f32 %v1377_v16, %v440_v12  ;;  %v1379_v32 = vsel %vm480_vm9, 1.0, %v1679_v38  ;;  %v1380_v37 = vsel %vm481_vm10, 1.0, %v1679_v38  ;;  %v2244_v39 = vsel %vm482_vm11, 1.0, %v1679_v38  ;;  %v2336_v16 = vpop.permute.xlu0 %827 }
  0xcd   :  { %v1382_v40 = vsel %vm483_vm12, 1.0, %v1679_v38  ;;  %v1383_v41 = vsel %vm484_vm13, 1.0, %v1679_v38  ;;  %v1384_v42 = vsel %vm485_vm14, 1.0, %v1679_v38  ;;  %v1385_v20 = vsel %vm486_vm15, 1.0, %v1679_v38 }
  0xce   :  { %v503_v43 = vadd.f32 %v1378_v24, %v468_v4  ;;  %vm514_vm0 = vcmp.eq.s32.totalorder %v2239_v25, %v1922_v28  ;;  %vm516_vm1 = vcmp.eq.s32.totalorder %v2239_v25, %v1928_v30  ;;  %vm518_vm2 = vcmp.eq.s32.totalorder %v2239_v25, %v1934_v33 }
  0xcf   :  { %vm519_vm3 = vcmp.eq.s32.totalorder %v2239_v25, %v1937_v34  ;;  %vm520_vm4 = vcmp.eq.s32.totalorder %v2239_v25, %v1940_v35  ;;  %vm521_vm5 = vcmp.eq.s32.totalorder %v2239_v25, %v1943_v36  ;;  %v505_v45 = vadd.f32 %v1380_v37, %v470_v19 }
  0xd0   :  { %v507_v46 = vadd.f32 %v1382_v40, %v472_v22  ;;  %v508_v47 = vadd.f32 %v1383_v41, %v473_v23  ;;  %v509_v49 = vadd.f32 %v1384_v42, %v474_v26  ;;  %v510_v50 = vadd.f32 %v1385_v20, %v475_v27 }
  0xd1   :  { %vm515_vm6 = vcmp.eq.s32.totalorder %v2239_v25, %v1925_v29  ;;  %v1386_v51 = vsel %vm514_vm0, 1.0, %v1679_v38  ;;  %v1388_v52 = vsel %vm516_vm1, 1.0, %v1679_v38  ;;  %v1390_v53 = vsel %vm518_vm2, 1.0, %v1679_v38 }
  0xd2   :  { %v1391_v54 = vsel %vm519_vm3, 1.0, %v1679_v38  ;;  %v1392_v55 = vsel %vm520_vm4, 1.0, %v1679_v38  ;;  %v1393_v56 = vsel %vm521_vm5, 1.0, %v1679_v38  ;;  %vm517_vm7 = vcmp.eq.s32.totalorder %v2239_v25, %v1931_v31 }
  0xd3   :  { %vm549_vm8 = vcmp.eq.s32.totalorder %v2173_v48, %v1922_v28  ;;  %vm551_vm9 = vcmp.eq.s32.totalorder %v2173_v48, %v1928_v30  ;;  %vm553_vm10 = vcmp.eq.s32.totalorder %v2173_v48, %v1934_v33  ;;  %v2282_v58 = vadd.f32 %v1386_v51, %v503_v43 }
  0xd4   :  { %v2284_v59 = vadd.f32 %v1388_v52, %v505_v45  ;;  %vm554_vm11 = vcmp.eq.s32.totalorder %v2173_v48, %v1937_v34  ;;  %vm555_vm12 = vcmp.eq.s32.totalorder %v2173_v48, %v1940_v35  ;;  %v542_v61 = vadd.f32 %v1390_v53, %v507_v46 }
  0xd5   :  { %v2292_v62 = vadd.f32 %v1391_v54, %v508_v47  ;;  %v2294_v63 = vadd.f32 %v1392_v55, %v509_v49  ;;  %v2296_v1 = vadd.f32 %v1393_v56, %v510_v50  ;;  %vm556_vm13 = vcmp.eq.s32.totalorder %v2173_v48, %v1943_v36 }
  0xd6   :  { %v1394_v2 = vsel %vm549_vm8, 1.0, %v1679_v38  ;;  %v2302_v3 = vsel %vm551_vm9, 1.0, %v1679_v38  ;;  %v1398_v5 = vsel %vm553_vm10, 1.0, %v1679_v38  ;;  %v2308_v7 = vsel %vm554_vm11, 1.0, %v1679_v38 }
  0xd7   :  { %v2311_v8 = vsel %vm555_vm12, 1.0, %v1679_v38  ;;  %v504_v9 = vadd.f32 %v1379_v32, %v2216_v17  ;;  %v1387_v10 = vsel %vm515_vm6, 1.0, %v1679_v38  ;;  %vm550_vm14 = vcmp.eq.s32.totalorder %v2173_v48, %v1925_v29 }
  0xd8   :  { %vm585_vm15 = vcmp.eq.s32.totalorder %v2194_v0, %v1925_v29  ;;  %vm620_vm0 = vcmp.eq.s32.totalorder %v2272_v57, %v1925_v29  ;;  %vm655_vm1 = vcmp.eq.s32.totalorder %v2220_v18, %v1925_v29  ;;  %v2327_v11 = vsel %vm556_vm13, 1.0, %v1679_v38 }
  0xd9   :  { %v2329_v12 = vadd.f32 %v1398_v5, %v542_v61  ;;  %v539_v13 = vadd.f32 %v1387_v10, %v504_v9  ;;  %v1395_v14 = vsel %vm550_vm14, 1.0, %v1679_v38  ;;  %vm584_vm2 = vcmp.eq.s32.totalorder %v2194_v0, %v1922_v28 }
  0xda   :  { %v1403_v4 = vsel %vm585_vm15, 1.0, %v1679_v38  ;;  %vm690_vm3 = vcmp.eq.s32.totalorder %v2254_v44, %v1925_v29  ;;  %vm725_vm4 = vcmp.eq.s32.totalorder %v2305_v6, %v1925_v29  ;;  %v1411_v19 = vsel %vm620_vm0, 1.0, %v1679_v38 }
  0xdb   :  { %v574_v17 = vadd.f32 %v1395_v14, %v539_v13  ;;  %v1419_v22 = vsel %vm655_vm1, 1.0, %v1679_v38  ;;  %vm760_vm5 = vcmp.eq.s32.totalorder %v2290_v60, %v1925_v29  ;;  %v1427_v23 = vsel %vm690_vm3, 1.0, %v1679_v38 }
  0xdc   :  { %v1435_v24 = vsel %vm725_vm4, 1.0, %v1679_v38  ;;  %v506_v26 = vadd.f32 %v2244_v39, %v2222_v21  ;;  %v1389_v27 = vsel %vm517_vm7, 1.0, %v1679_v38  ;;  %vm795_vm6 = vcmp.eq.s32.totalorder %v2334_v15, %v1925_v29 }
  0xdd   :  { %v609_v32 = vadd.f32 %v1403_v4, %v574_v17  ;;  %vm830_vm8 = vcmp.eq.s32.totalorder %v2336_v16, %v1925_v29  ;;  %vm552_vm9 = vcmp.eq.s32.totalorder %v2173_v48, %v1931_v31  ;;  %vm587_vm10 = vcmp.eq.s32.totalorder %v2194_v0, %v1931_v31 }
  0xde   :  { %v541_v37 = vadd.f32 %v1389_v27, %v506_v26  ;;  %v1397_v40 = vsel %vm552_vm9, 1.0, %v1679_v38  ;;  %vm622_vm11 = vcmp.eq.s32.totalorder %v2272_v57, %v1931_v31  ;;  %vm586_vm7 = vcmp.eq.s32.totalorder %v2194_v0, %v1928_v30 }
  0xdf   :  { %v644_v21 = vadd.f32 %v1411_v19, %v609_v32  ;;  %v1443_v25 = vsel %vm760_vm5, 1.0, %v1679_v38  ;;  %v1405_v39 = vsel %vm587_vm10, 1.0, %v1679_v38  ;;  %vm657_vm12 = vcmp.eq.s32.totalorder %v2220_v18, %v1931_v31 }
  0xe0   :  { %v1451_v48 = vsel %vm795_vm6, 1.0, %v1679_v38  ;;  %v576_v41 = vadd.f32 %v1397_v40, %v541_v37  ;;  %vm692_vm13 = vcmp.eq.s32.totalorder %v2254_v44, %v1931_v31  ;;  %vm727_vm14 = vcmp.eq.s32.totalorder %v2305_v6, %v1931_v31 }
  0xe1   :  { %v679_v42 = vadd.f32 %v1419_v22, %v644_v21  ;;  %v1459_v20 = vsel %vm830_vm8, 1.0, %v1679_v38  ;;  %v1413_v43 = vsel %vm622_vm11, 1.0, %v1679_v38  ;;  %v1421_v45 = vsel %vm657_vm12, 1.0, %v1679_v38 }
  0xe2   :  { %v611_v46 = vadd.f32 %v1405_v39, %v576_v41  ;;  %v1429_v47 = vsel %vm692_vm13, 1.0, %v1679_v38  ;;  %v1437_v49 = vsel %vm727_vm14, 1.0, %v1679_v38  ;;  %vm762_vm15 = vcmp.eq.s32.totalorder %v2290_v60, %v1931_v31 }
  0xe3   :  { %v714_v50 = vadd.f32 %v1427_v23, %v679_v42  ;;  %vm797_vm0 = vcmp.eq.s32.totalorder %v2334_v15, %v1931_v31  ;;  %vm832_vm1 = vcmp.eq.s32.totalorder %v2336_v16, %v1931_v31  ;;  %v573_v29 = vadd.f32 %v1394_v2, %v2282_v58 }
  0xe4   :  { %v646_v51 = vadd.f32 %v1413_v43, %v611_v46  ;;  %v1402_v52 = vsel %vm584_vm2, 1.0, %v1679_v38  ;;  %vm619_vm3 = vcmp.eq.s32.totalorder %v2272_v57, %v1922_v28  ;;  %vm654_vm4 = vcmp.eq.s32.totalorder %v2220_v18, %v1922_v28 }
  0xe5   :  { %v749_v53 = vadd.f32 %v1435_v24, %v714_v50  ;;  %v1445_v54 = vsel %vm762_vm15, 1.0, %v1679_v38  ;;  %v608_v55 = vadd.f32 %v1402_v52, %v573_v29  ;;  %v1410_v56 = vsel %vm619_vm3, 1.0, %v1679_v38 }
  0xe6   :  { %vm589_vm5 = vcmp.eq.s32.totalorder %v2194_v0, %v1937_v34  ;;  %v681_v58 = vadd.f32 %v1421_v45, %v646_v51  ;;  %v1418_v61 = vsel %vm654_vm4, 1.0, %v1679_v38  ;;  %vm689_vm2 = vcmp.eq.s32.totalorder %v2254_v44, %v1922_v28  ;;  %v940_v51 = vld [vmem:[%s2830_s1 + $0x278] sm:$0xff] }
  0xe7   :  { %vm724_vm6 = vcmp.eq.s32.totalorder %v2305_v6, %v1922_v28  ;;  %v784_v2 = vadd.f32 %v1443_v25, %v749_v53  ;;  %v1453_v5 = vsel %vm797_vm0, 1.0, %v1679_v38  ;;  %v1461_v9 = vsel %vm832_vm1, 1.0, %v1679_v38 }
  0xe8   :  { %v643_v10 = vadd.f32 %v1410_v56, %v608_v55  ;;  %v716_v13 = vadd.f32 %v1429_v47, %v681_v58  ;;  %v1426_v14 = vsel %vm689_vm2, 1.0, %v1679_v38  ;;  %v1434_v4 = vsel %vm724_vm6, 1.0, %v1679_v38  ;;  %v955_v55 = vld [vmem:[%s2830_s1 + $0x2f0] sm:$0xff] }
  0xe9   :  { %vm759_vm8 = vcmp.eq.s32.totalorder %v2290_v60, %v1922_v28  ;;  %v819_v17 = vadd.f32 %v1451_v48, %v784_v2  ;;  %vm794_vm9 = vcmp.eq.s32.totalorder %v2334_v15, %v1922_v28  ;;  %vm829_vm10 = vcmp.eq.s32.totalorder %v2336_v16, %v1922_v28 }
  0xea   :  { %v678_v19 = vadd.f32 %v1418_v61, %v643_v10  ;;  %v751_v22 = vadd.f32 %v1437_v49, %v716_v13  ;;  %v575_v31 = vadd.f32 %v2302_v3, %v2284_v59  ;;  %v1404_v23 = vsel %vm586_vm7, 1.0, %v1679_v38  ;;  %v954_v13 = vld [vmem:[%s2830_s1 + $0x2e8] sm:$0xff] }
  0xeb   :  { %vm621_vm11 = vcmp.eq.s32.totalorder %v2272_v57, %v1928_v30  ;;  %v854_v24 = vadd.f32 %v1459_v20, %v819_v17  ;;  %vm656_vm12 = vcmp.eq.s32.totalorder %v2220_v18, %v1928_v30  ;;  %v1442_v37 = vsel %vm759_vm8, 1.0, %v1679_v38 }
  0xec   :  { %v713_v26 = vadd.f32 %v1426_v14, %v678_v19  ;;  %v1412_v27 = vsel %vm621_vm11, 1.0, %v1679_v38  ;;  %v786_v32 = vadd.f32 %v1445_v54, %v751_v22  ;;  %v610_v40 = vadd.f32 %v1404_v23, %v575_v31  ;;  %v953_v22 = vld [vmem:[%s2830_s1 + $0x2e0] sm:$0xff] }
  0xed   :  { %vm691_vm13 = vcmp.eq.s32.totalorder %v2254_v44, %v1928_v30  ;;  %1053 = vmatprep.mubr.f32.mxu0 %v854_v24  ;;  %v1420_v3 = vsel %vm656_vm12, 1.0, %v1679_v38  ;;  %vm726_vm7 = vcmp.eq.s32.totalorder %v2305_v6, %v1928_v30  ;;  %vm761_vm14 = vcmp.eq.s32.totalorder %v2290_v60, %v1928_v30 }
  0xee   :  { %v748_v59 = vadd.f32 %v1434_v4, %v713_v26  ;;  %vm588_vm15 = vcmp.eq.s32.totalorder %v2194_v0, %v1934_v33  ;;  %v821_v21 = vadd.f32 %v1453_v5, %v786_v32  ;;  %v1450_v25 = vsel %vm794_vm9, 1.0, %v1679_v38  ;;  %v937_v26 = vld [vmem:[%s2830_s1 + $0x260] sm:$0xff]  ;;  %v972_v32 = vld [vmem:[%s2830_s1 + $0x378] sm:$0xff] }
  0xef   :  { %v1458_v39 = vsel %vm829_vm10, 1.0, %v1679_v38  ;;  %v645_v48 = vadd.f32 %v1412_v27, %v610_v40  ;;  %v1428_v42 = vsel %vm691_vm13, 1.0, %v1679_v38  ;;  %v1436_v20 = vsel %vm726_vm7, 1.0, %v1679_v38 }
  0xf0   :  { %v783_v41 = vadd.f32 %v1442_v37, %v748_v59  ;;  %v1444_v43 = vsel %vm761_vm14, 1.0, %v1679_v38  ;;  %v856_v45 = vadd.f32 %v1461_v9, %v821_v21  ;;  %vm796_vm0 = vcmp.eq.s32.totalorder %v2334_v15, %v1928_v30  ;;  %v952_v59 = vld [vmem:[%s2830_s1 + $0x2d8] sm:$0xff]  ;;  %v987_v21 = vld [vmem:[%s2830_s1 + $0x3f0] sm:$0xff] }
  0xf1   :  { %v680_v46 = vadd.f32 %v1420_v3, %v645_v48  ;;  %v578_v47 = vadd.f32 %v2308_v7, %v2292_v62  ;;  %v1407_v28 = vsel %vm589_vm5, 1.0, %v1679_v38  ;;  %vm624_vm1 = vcmp.eq.s32.totalorder %v2272_v57, %v1937_v34 }
  0xf2   :  { %v818_v49 = vadd.f32 %v1450_v25, %v783_v41  ;;  %vm659_vm3 = vcmp.eq.s32.totalorder %v2220_v18, %v1937_v34  ;;  %1123 = vmatprep.mubr.f32.mxu1 %v856_v45  ;;  %vm831_vm4 = vcmp.eq.s32.totalorder %v2336_v16, %v1928_v30  ;;  %v1415_v62 = vsel %vm624_vm1, 1.0, %v1679_v38  ;;  %v939_v30 = vld [vmem:[%s2830_s1 + $0x270] sm:$0xff] }
  0xf3   :  { %v715_v50 = vadd.f32 %v1428_v42, %v680_v46  ;;  %v613_v29 = vadd.f32 %v1407_v28, %v578_v47  ;;  %v1423_v52 = vsel %vm659_vm3, 1.0, %v1679_v38  ;;  %vm694_vm5 = vcmp.eq.s32.totalorder %v2254_v44, %v1937_v34  ;;  %v971_v42 = vld [vmem:[%s2830_s1 + $0x370] sm:$0xff]  ;;  %v986_v47 = vld [vmem:[%s2830_s1 + $0x3e8] sm:$0xff] }
  0xf4   :  { %v853_v7 = vadd.f32 %v1458_v39, %v818_v49  ;;  %vm729_vm2 = vcmp.eq.s32.totalorder %v2305_v6, %v1937_v34  ;;  %vm591_vm6 = vcmp.eq.s32.totalorder %v2194_v0, %v1943_v36  ;;  %v1452_v54 = vsel %vm796_vm0, 1.0, %v1679_v38  ;;  %v936_v39 = vld [vmem:[%s2830_s1 + $0x258] sm:$0xff]  ;;  %v970_v28 = vld [vmem:[%s2830_s1 + $0x368] sm:$0xff] }
  0xf5   :  { %v750_v53 = vadd.f32 %v1436_v20, %v715_v50  ;;  %v648_v56 = vadd.f32 %v1415_v62, %v613_v29  ;;  %v1460_v58 = vsel %vm831_vm4, 1.0, %v1679_v38  ;;  %v1431_v61 = vsel %vm694_vm5, 1.0, %v1679_v38  ;;  %v951_v20 = vld [vmem:[%s2830_s1 + $0x2d0] sm:$0xff]  ;;  %v950_v50 = vld [vmem:[%s2830_s1 + $0x2c8] sm:$0xff] }
  0xf6   :  { %1054 = vmatmul.mubr.f32.vlgmr.msra.gmra.mxu0 %v853_v7  ;;  %v1439_v2 = vsel %vm729_vm2, 1.0, %v1679_v38  ;;  %vm764_vm8 = vcmp.eq.s32.totalorder %v2290_v60, %v1937_v34  ;;  %vm799_vm9 = vcmp.eq.s32.totalorder %v2334_v15, %v1937_v34  ;;  %v580_v10 = vadd.f32 %v2327_v11, %v2296_v1  ;;  %v938_v1 = vld [vmem:[%s2830_s1 + $0x268] sm:$0xff]  ;;  %v985_v7 = vld [vmem:[%s2830_s1 + $0x3e0] sm:$0xff] }
  0xf7   :  { %v785_v5 = vadd.f32 %v1444_v43, %v750_v53  ;;  %1537 = vmatpush3.msra.mxu0 %v940_v51  ;;  %v683_v9 = vadd.f32 %v1423_v52, %v648_v56  ;;  %v1409_v14 = vsel %vm591_vm6, 1.0, %v1679_v38  ;;  %vm626_vm10 = vcmp.eq.s32.totalorder %v2272_v57, %v1943_v36  ;;  %v969_v52 = vld [vmem:[%s2830_s1 + $0x360] sm:$0xff]  ;;  %v934_v53 = vld [vmem:[%s2830_s1 + $0x248] sm:$0xff] }
  0xf8   :  { %1538 = vmatprep.subr.mxu0 %v955_v55  ;;  %vm661_vm11 = vcmp.eq.s32.totalorder %v2220_v18, %v1943_v36  ;;  %vm696_vm12 = vcmp.eq.s32.totalorder %v2254_v44, %v1943_v36  ;;  %v615_v17 = vadd.f32 %v1409_v14, %v580_v10  ;;  %v1417_v19 = vsel %vm626_vm10, 1.0, %v1679_v38  ;;  %v984_v55 = vld [vmem:[%s2830_s1 + $0x3d8] sm:$0xff]  ;;  %v949_v56 = vld [vmem:[%s2830_s1 + $0x2c0] sm:$0xff] }
  0xf9   :  { %v820_v11 = vadd.f32 %v1452_v54, %v785_v5  ;;  %v718_v4 = vadd.f32 %v1431_v61, %v683_v9  ;;  %1539 = vmatpush3.msra.mxu0 %v939_v30  ;;  %v1406_v31 = vsel %vm588_vm15, 1.0, %v1679_v38  ;;  %v1447_v23 = vsel %vm764_vm8, 1.0, %v1679_v38  ;;  %v933_v30 = vld [vmem:[%s2830_s1 + $0x240] sm:$0xff]  ;;  %v948_v14 = vld [vmem:[%s2830_s1 + $0x2b8] sm:$0xff] }
  0xfa   :  { %vm834_vm13 = vcmp.eq.s32.totalorder %v2336_v16, %v1937_v34  ;;  %v1425_v24 = vsel %vm661_vm11, 1.0, %v1679_v38  ;;  %1540 = vmatprep.subr.mxu0 %v954_v13  ;;  %v650_v40 = vadd.f32 %v1417_v19, %v615_v17  ;;  %vm731_vm7 = vcmp.eq.s32.totalorder %v2305_v6, %v1943_v36  ;;  %v983_v13 = vld [vmem:[%s2830_s1 + $0x3d0] sm:$0xff] }
  0xfb   :  { %v855_v27 = vadd.f32 %v1460_v58, %v820_v11  ;;  %v753_v37 = vadd.f32 %v1439_v2, %v718_v4  ;;  %1541 = vmatpush3.msra.mxu0 %v938_v1  ;;  %vm590_vm14 = vcmp.eq.s32.totalorder %v2194_v0, %v1940_v35  ;;  %vm623_vm15 = vcmp.eq.s32.totalorder %v2272_v57, %v1934_v33  ;;  %v968_v2 = vld [vmem:[%s2830_s1 + $0x358] sm:$0xff] }
  0xfc   :  { %v1455_v3 = vsel %vm799_vm9, 1.0, %v1679_v38  ;;  %v1433_v25 = vsel %vm696_vm12, 1.0, %v1679_v38  ;;  %1542 = vmatprep.subr.mxu0 %v953_v22  ;;  %v685_v41 = vadd.f32 %v1425_v24, %v650_v40  ;;  %vm766_vm0 = vcmp.eq.s32.totalorder %v2290_v60, %v1943_v36  ;;  %v932_v4 = vld [vmem:[%s2830_s1 + $0x238] sm:$0xff]  ;;  %v965_v40 = vld [vmem:[%s2830_s1 + $0x340] sm:$0xff] }
  0xfd   :  { %1124 = vmatmul.mubr.f32.vlgmr.msra.gmra.mxu1 %v855_v27  ;;  %v788_v48 = vadd.f32 %v1447_v23, %v753_v37  ;;  %1543 = vmatpush3.msra.mxu0 %v937_v26  ;;  %v579_v43 = vadd.f32 %v2311_v8, %v2294_v63  ;;  %v1463_v45 = vsel %vm834_vm13, 1.0, %v1679_v38  ;;  %v1441_v46 = vsel %vm731_vm7, 1.0, %v1679_v38  ;;  %v935_v63 = vld [vmem:[%s2830_s1 + $0x250] sm:$0xff]  ;;  %v981_v26 = vld [vmem:[%s2830_s1 + $0x3c0] sm:$0xff] }
  0xfe   :  { %1572 = vmatpush3.msra.mxu1 %v972_v32  ;;  %1544 = vmatprep.subr.mxu0 %v952_v59  ;;  %v612_v8 = vadd.f32 %v1406_v31, %v2329_v12  ;;  %v720_v34 = vadd.f32 %v1433_v25, %v685_v41  ;;  %vm801_vm1 = vcmp.eq.s32.totalorder %v2334_v15, %v1943_v36  ;;  %v1414_v12 = vsel %vm623_vm15, 1.0, %v1679_v38  ;;  %v966_v31 = vld [vmem:[%s2830_s1 + $0x348] sm:$0xff]  ;;  %v947_v23 = vld [vmem:[%s2830_s1 + $0x2b0] sm:$0xff] }
  0xff   :  { %v823_v49 = vadd.f32 %v1455_v3, %v788_v48  ;;  %1573 = vmatprep.subr.mxu1 %v987_v21  ;;  %1545 = vmatpush3.msra.mxu0 %v936_v39  ;;  %v1408_v29 = vsel %vm590_vm14, 1.0, %v1679_v38  ;;  %vm625_vm3 = vcmp.eq.s32.totalorder %v2272_v57, %v1940_v35  ;;  %v1449_v62 = vsel %vm766_vm0, 1.0, %v1679_v38  ;;  %v982_v57 = vld [vmem:[%s2830_s1 + $0x3c8] sm:$0xff]  ;;  %v931_v27 = vld [vmem:[%s2830_s1 + $0x230] sm:$0xff]  ;;  %v964_v39 = vld [vmem:[%s2830_s1 + $0x338] sm:$0xff] }
 0x100   :  { %1574 = vmatpush3.msra.mxu1 %v971_v42  ;;  %1546 = vmatprep.subr.mxu0 %v951_v20  ;;  %vm658_vm4 = vcmp.eq.s32.totalorder %v2220_v18, %v1934_v33  ;;  %v755_v0 = vadd.f32 %v1441_v46, %v720_v34  ;;  %vm836_vm5 = vcmp.eq.s32.totalorder %v2336_v16, %v1943_v36  ;;  %v1457_v54 = vsel %vm801_vm1, 1.0, %v1679_v38  ;;  %v967_v36 = vld [vmem:[%s2830_s1 + $0x350] sm:$0xff]  ;;  %v946_v59 = vld [vmem:[%s2830_s1 + $0x2a8] sm:$0xff]  ;;  %v945_v48 = vld [vmem:[%s2830_s1 + $0x2a0] sm:$0xff] }
 0x101   :  { %v858_v51 = vadd.f32 %v1463_v45, %v823_v49  ;;  %1575 = vmatprep.subr.mxu1 %v986_v47  ;;  %1547 = vmatpush3.msra.mxu0 %v935_v63  ;;  %v647_v58 = vadd.f32 %v1414_v12, %v612_v8  ;;  %vm693_vm2 = vcmp.eq.s32.totalorder %v2254_v44, %v1934_v33  ;;  %v1422_v5 = vsel %vm658_vm4, 1.0, %v1679_v38  ;;  %v930_v21 = vld [vmem:[%s2830_s1 + $0x228] sm:$0xff]  ;;  %v929_v42 = vld [vmem:[%s2830_s1 + $0x220] sm:$0xff]  ;;  %v944_v45 = vld [vmem:[%s2830_s1 + $0x298] sm:$0xff] }
 0x102   :  { %1576 = vmatpush3.msra.mxu1 %v970_v28  ;;  %1548 = vmatprep.subr.mxu0 %v950_v50  ;;  %v790_v61 = vadd.f32 %v1449_v62, %v755_v0  ;;  %v614_v9 = vadd.f32 %v1408_v29, %v579_v43  ;;  %v1465_v10 = vsel %vm836_vm5, 1.0, %v1679_v38  ;;  %v1416_v1 = vsel %vm625_vm3, 1.0, %v1679_v38  ;;  %v963_v43 = vld [vmem:[%s2830_s1 + $0x330] sm:$0xff]  ;;  %v978_v63 = vld [vmem:[%s2830_s1 + $0x3a8] sm:$0xff]  ;;  %v928_v8 = vld [vmem:[%s2830_s1 + $0x218] sm:$0xff] }
 0x103   :  { %1193 = vmatprep.mubr.f32.mxu0 %v858_v51  ;;  %1577 = vmatprep.subr.mxu1 %v985_v7  ;;  %v1430_v17 = vsel %vm693_vm2, 1.0, %v1679_v38  ;;  %vm660_vm6 = vcmp.eq.s32.totalorder %v2220_v18, %v1940_v35  ;;  %v682_v19 = vadd.f32 %v1422_v5, %v647_v58  ;;  %vm728_vm8 = vcmp.eq.s32.totalorder %v2305_v6, %v1934_v33  ;;  %v980_v18 = vld [vmem:[%s2830_s1 + $0x3b8] sm:$0xff]  ;;  %v962_v34 = vld [vmem:[%s2830_s1 + $0x328] sm:$0xff]  ;;  %v943_v28 = vld [vmem:[%s2830_s1 + $0x290] sm:$0xff] }
 0x104   :  { %1578 = vmatpush3.msra.mxu1 %v969_v52  ;;  %1549 = vmatpush3.msra.mxu0 %v934_v53  ;;  %v825_v11 = vadd.f32 %v1457_v54, %v790_v61  ;;  %v649_v24 = vadd.f32 %v1416_v1, %v614_v9  ;;  %vm695_vm9 = vcmp.eq.s32.totalorder %v2254_v44, %v1940_v35  ;;  %v1424_v37 = vsel %vm660_vm6, 1.0, %v1679_v38  ;;  %v979_v44 = vld [vmem:[%s2830_s1 + $0x3b0] sm:$0xff]  ;;  %v961_v62 = vld [vmem:[%s2830_s1 + $0x320] sm:$0xff]  ;;  %v942_v7 = vld [vmem:[%s2830_s1 + $0x288] sm:$0xff] }
 0x105   :  { %1579 = vmatprep.subr.mxu1 %v984_v55  ;;  %1550 = vmatprep.subr.mxu0 %v949_v56  ;;  %v717_v32 = vadd.f32 %v1430_v17, %v682_v19  ;;  %v1438_v3 = vsel %vm728_vm8, 1.0, %v1679_v38  ;;  %vm763_vm10 = vcmp.eq.s32.totalorder %v2290_v60, %v1934_v33  ;;  %v1432_v25 = vsel %vm695_vm9, 1.0, %v1679_v38  ;;  %v927_v12 = vld [vmem:[%s2830_s1 + $0x210] sm:$0xff]  ;;  %v976_v0 = vld [vmem:[%s2830_s1 + $0x398] sm:$0xff]  ;;  %v926_v52 = vld [vmem:[%s2830_s1 + $0x208] sm:$0xff] }
 0x106   :  { %1580 = vmatpush3.msra.mxu1 %v968_v2  ;;  %1551 = vmatpush3.msra.mxu0 %v933_v30  ;;  %v860_v22 = vadd.f32 %v1465_v10, %v825_v11  ;;  %v684_v41 = vadd.f32 %v1424_v37, %v649_v24  ;;  %vm730_vm11 = vcmp.eq.s32.totalorder %v2305_v6, %v1940_v35  ;;  %v1446_v46 = vsel %vm763_vm10, 1.0, %v1679_v38  ;;  %v977_v6 = vld [vmem:[%s2830_s1 + $0x3a0] sm:$0xff]  ;;  %v960_v55 = vld [vmem:[%s2830_s1 + $0x318] sm:$0xff]  ;;  %v974_v5 = vld [vmem:[%s2830_s1 + $0x388] sm:$0xff] }
 0x107   :  { %1581 = vmatprep.subr.mxu1 %v983_v13  ;;  %1552 = vmatprep.subr.mxu0 %v948_v14  ;;  %v752_v20 = vadd.f32 %v1438_v3, %v717_v32  ;;  %vm798_vm12 = vcmp.eq.s32.totalorder %v2334_v15, %v1934_v33  ;;  %v1440_v49 = vsel %vm730_vm11, 1.0, %v1679_v38  ;;  %vm765_vm13 = vcmp.eq.s32.totalorder %v2290_v60, %v1940_v35  ;;  %v941_v56 = vld [vmem:[%s2830_s1 + $0x280] sm:$0xff]  ;;  %v975_v60 = vld [vmem:[%s2830_s1 + $0x390] sm:$0xff] }
 0x108   :  { %1582 = vmatpush3.msra.mxu1 %v967_v36  ;;  %1553 = vmatpush3.msra.mxu0 %v932_v4  ;;  %v719_v47 = vadd.f32 %v1432_v25, %v684_v41  ;;  %v1454_v50 = vsel %vm798_vm12, 1.0, %v1679_v38  ;;  %vm833_vm7 = vcmp.eq.s32.totalorder %v2336_v16, %v1934_v33  ;;  %vm800_vm14 = vcmp.eq.s32.totalorder %v2334_v15, %v1940_v35  ;;  %v925_v61 = vld [vmem:[%s2830_s1 + $0x200] sm:$0xff]  ;;  %v959_v33 = vld [vmem:[%s2830_s1 + $0x310] sm:$0xff]  ;;  %v958_v15 = vld [vmem:[%s2830_s1 + $0x308] sm:$0xff] }
 0x109   :  { %1263 = vmatprep.mubr.f32.mxu1 %v860_v22  ;;  %1583 = vmatprep.subr.mxu1 %v982_v57  ;;  %v787_v29 = vadd.f32 %v1446_v46, %v752_v20  ;;  %v1448_v54 = vsel %vm765_vm13, 1.0, %v1679_v38  ;;  %v1462_v58 = vsel %vm833_vm7, 1.0, %v1679_v38  ;;  %v1456_v2 = vsel %vm800_vm14, 1.0, %v1679_v38  ;;  %v973_v13 = vld [vmem:[%s2830_s1 + $0x380] sm:$0xff] }
 0x10a   :  { %1584 = vmatpush3.msra.mxu1 %v966_v31  ;;  %1554 = vmatprep.subr.mxu0 %v947_v23  ;;  %v754_v51 = vadd.f32 %v1440_v49, %v719_v47  ;;  %vm835_vm15 = vcmp.eq.s32.totalorder %v2336_v16, %v1940_v35  ;;  %v957_v16 = vld [vmem:[%s2830_s1 + $0x300] sm:$0xff] }
 0x10b   :  { %1585 = vmatprep.subr.mxu1 %v981_v26  ;;  %1555 = vmatpush3.msra.mxu0 %v931_v27  ;;  %v822_v53 = vadd.f32 %v1454_v50, %v787_v29  ;;  %v1464_v35 = vsel %vm835_vm15, 1.0, %v1679_v38 }
 0x10c   :  { %1586 = vmatpush3.msra.mxu1 %v965_v40  ;;  %1556 = vmatprep.subr.mxu0 %v946_v59  ;;  %v789_v30 = vadd.f32 %v1448_v54, %v754_v51 }
 0x10d   :  { %1587 = vmatprep.subr.mxu1 %v980_v18  ;;  %1557 = vmatpush3.msra.mxu0 %v930_v21  ;;  %v857_v9 = vadd.f32 %v1462_v58, %v822_v53 }
 0x10e   :  { %1588 = vmatpush3.msra.mxu1 %v964_v39  ;;  %1558 = vmatprep.subr.mxu0 %v945_v48  ;;  %v824_v10 = vadd.f32 %v1456_v2, %v789_v30 }
 0x10f   :  { %1589 = vmatprep.subr.mxu1 %v979_v44  ;;  %1559 = vmatpush3.msra.mxu0 %v929_v42 }
 0x110   :  { %1590 = vmatpush3.msra.mxu1 %v963_v43  ;;  %1560 = vmatprep.subr.mxu0 %v944_v45  ;;  %v859_v14 = vadd.f32 %v1464_v35, %v824_v10 }
 0x111   :  { %1591 = vmatprep.subr.mxu1 %v978_v63  ;;  %1561 = vmatpush3.msra.mxu0 %v928_v8 }
 0x112   :  { %1592 = vmatpush3.msra.mxu1 %v962_v34  ;;  %1562 = vmatprep.subr.mxu0 %v943_v28 }
 0x113   :  { %1593 = vmatprep.subr.mxu1 %v977_v6  ;;  %1563 = vmatpush3.msra.mxu0 %v927_v12 }
 0x114   :  { %1594 = vmatpush3.msra.mxu1 %v961_v62  ;;  %1564 = vmatprep.subr.mxu0 %v942_v7 }
 0x115   :  { %1595 = vmatprep.subr.mxu1 %v976_v0  ;;  %1565 = vmatpush3.msra.mxu0 %v926_v52 }
 0x116   :  { %1596 = vmatpush3.msra.mxu1 %v960_v55  ;;  %1566 = vmatprep.subr.mxu0 %v941_v56 }
 0x117   :  { %1597 = vmatprep.subr.mxu1 %v975_v60  ;;  %1567 = vmatpush3.msra.mxu0 %v925_v61 }
 0x118   :  { %1598 = vmatpush3.msra.mxu1 %v959_v33  ;;  %1194 = vmatmul.mubr.f32.vlgmr.msra.gmra.mxu0 %v857_v9 }
 0x119   :  { %1599 = vmatprep.subr.mxu1 %v974_v5 }
 0x11a   :  { %1600 = vmatpush3.msra.mxu1 %v958_v15 }
 0x11b   :  { %1601 = vmatprep.subr.mxu1 %v973_v13 }
 0x11c   :  { %1602 = vmatpush3.msra.mxu1 %v957_v16 }
 0x11d   :  { %1264 = vmatmul.mubr.f32.vlgmr.msra.gmra.mxu1 %v859_v14 }
 0x1b6   :  { %v1498_v1 = vpop.f32.mrf.mxu0 }
 0x1b8   :  { %v1499_v36 = vpop.f32.mrf.mxu0 }
 0x1b9   :  { %v1500_v17 = vadd.f32 %v1499_v36, %v1498_v1 }
 0x1bd   :  { %v1533_v11 = vpop.f32.mrf.mxu1 }
 0x1bf   :  { %v1534_v4 = vpop.f32.mrf.mxu1 }
 0x1c0   :  { %v1535_v57 = vadd.f32 %v1534_v4, %v1533_v11 }
 0x1c2   :  { %v1126_v38 = vadd.f32 %v1535_v57, %v1500_v17 }
 0x1d8   :  { %v1568_v19 = vpop.f32.mrf.mxu0 }
 0x1da   :  { %v1569_v22 = vpop.f32.mrf.mxu0 }
 0x1db   :  { %v1570_v31 = vadd.f32 %v1569_v22, %v1568_v19 }
 0x1dd   :  { %v1603_v23 = vpop.f32.mrf.mxu1  ;;  %v1196_v24 = vadd.f32 %v1570_v31, %v1126_v38 }
 0x1df   :  { %v1604_v26 = vpop.f32.mrf.mxu1 }
 0x1e0   :  { %v1605_v27 = vadd.f32 %v1604_v26, %v1603_v23 }
 0x1e2   :  { %v1266_v32 = vadd.f32 %v1605_v27, %v1196_v24 }
 0x1e4   :  { %1269 = vst [vmem:[%s2831_s2] sm:$0xff] %v1266_v32 }

</bundles_post_ra>
